<compile_context>
chip_gen: v6e
topology: v6e:2x2x1
jax: 0.10.0
libtpu: 0.0.40
codegen_flags: <defaults>
</compile_context>

<pallas_src>
import jax
import jax.numpy as jnp
from jax.experimental import pallas as pl
from jax.experimental.pallas import tpu as pltpu

IN_FEATURES = 512
OUT_FEATURES = 4096


def _round_up(x, m):
    return ((x + m - 1) // m) * m


def _linear_kernel(x_ref, w_ref, o_ref):
    # x_ref: (tm, K) f32 activation tile, w_ref: (K, tn) bf16 weight tile
    # (resident across the inner M grid axis), o_ref: (tm, tn) output tile.
    # The f32->bf16 pack of x repeats once per (N-tile, M-tile) pair but is
    # hidden under the HBM streams (kernel is memory-bound on all gens);
    # only worth hoisting if a bundle dump shows the VPU/vld slot binding.
    x = x_ref[...].astype(jnp.bfloat16)
    o_ref[...] = jnp.dot(
        x, w_ref[...], preferred_element_type=jnp.float32
    ).astype(o_ref.dtype)


def linear_matrix(x, w_t_bf16, *, tm=256, tn=2048, out_dtype=None):
    """Projection head forward: (M, K) f32 @ (K, N) bf16 -> (M, N).

    `w_t_bf16` is the nn.Linear weight already transposed to (K, N) and cast
    to bfloat16 ONCE at parameter level (no per-call transpose / cast).
    `out_dtype=None` keeps the PyTorch f32 output; pass jnp.bfloat16 on the
    training path (consumer is L2-normalize + CLIP logits) to halve the
    output HBM write.
    """
    M, K = x.shape
    K2, N = w_t_bf16.shape
    assert K == K2
    assert K % 128 == 0 and N % 128 == 0 and N % tn == 0
    if out_dtype is None:
        out_dtype = x.dtype

    # cdiv/padded M tiling: tile is 8-aligned and never exceeds tm, so a
    # non-multiple M (e.g. 4100) can't collapse into one VMEM-busting block.
    tm_eff = min(tm, _round_up(M, 8))
    m_pad = _round_up(M, tm_eff)
    if m_pad != M:
        x = jnp.pad(x, ((0, m_pad - M), (0, 0)))

    grid = (N // tn, m_pad // tm_eff)  # N outer (weight-resident), M inner.

    cost = pl.CostEstimate(
        flops=2 * m_pad * K * N,
        transcendentals=0,
        bytes_accessed=(m_pad * K * x.dtype.itemsize
                        + K * N * 2
                        + m_pad * N * jnp.dtype(out_dtype).itemsize),
    )

    out = pl.pallas_call(
        _linear_kernel,
        out_shape=jax.ShapeDtypeStruct((m_pad, N), out_dtype),
        grid_spec=pltpu.PrefetchScalarGridSpec(
            num_scalar_prefetch=0,
            grid=grid,
            in_specs=[
                # Activation M-tile: changes every inner step.
                pl.BlockSpec((tm_eff, K), lambda j, i: (i, 0)),
                # Weight N-tile: constant across the inner M axis -> DMA'd
                # once per outer step and kept resident in VMEM.
                pl.BlockSpec((K, tn), lambda j, i: (0, j)),
            ],
            out_specs=pl.BlockSpec((tm_eff, tn), lambda j, i: (i, j)),
        ),
        compiler_params=pltpu.CompilerParams(
            # Both axes independent (no K reduction axis: K=512 fits one
            # block) -> Mosaic may shard across the two v7x TensorCores;
            # neutral on single-TC v5e/v6e.
            dimension_semantics=("parallel", "parallel"),
        ),
        cost_estimate=cost,
    )(x, w_t_bf16)

    if m_pad != M:
        out = out[:M]
    return out


if __name__ == "__main__":
    key = jax.random.PRNGKey(0)
    kx, kw = jax.random.split(key)

    M = 8  # small batch of CLIP image feature vectors
    x = jax.random.normal(kx, (M, IN_FEATURES), dtype=jnp.float32)

    # nn.Linear(512, 4096, bias=False) weight, shape (out, in) = (4096, 512),
    # kaiming-uniform-like bound 1/sqrt(fan_in).
    bound = 1.0 / (IN_FEATURES ** 0.5)
    w = jax.random.uniform(
        kw, (OUT_FEATURES, IN_FEATURES), dtype=jnp.float32,
        minval=-bound, maxval=bound,
    )

    # One-time parameter-level layout change: transpose to (K, N) + bf16 cast.
    w_t_bf16 = jnp.asarray(w.T, dtype=jnp.bfloat16)

    # --- f32-output path (exact PyTorch semantics of Linear_Matrix) ---------
    y = jax.block_until_ready(linear_matrix(x, w_t_bf16))
    assert y.shape == (M, OUT_FEATURES) and y.dtype == jnp.float32

    # Reference 1: same bf16 quantization of inputs, exact f32 matmul.
    x_q = x.astype(jnp.bfloat16).astype(jnp.float32)
    w_q = w_t_bf16.astype(jnp.float32)
    y_ref = jnp.dot(x_q, w_q, precision=jax.lax.Precision.HIGHEST)
    assert jnp.allclose(y, y_ref, atol=2e-3, rtol=2e-3), (
        float(jnp.max(jnp.abs(y - y_ref))))

    # Reference 2: full-precision PyTorch semantics (x @ W.T), looser
    # tolerance accounting for bf16 quantization of weights/activations.
    y_f32 = jnp.dot(x, w.T, precision=jax.lax.Precision.HIGHEST)
    assert jnp.allclose(y, y_f32, atol=5e-2, rtol=5e-2)

    # --- padded-M path (non-multiple batch, exercises the cdiv tiling) ------
    M_odd = 5
    x_odd = x[:M_odd]
    y_odd = jax.block_until_ready(linear_matrix(x_odd, w_t_bf16))
    assert y_odd.shape == (M_odd, OUT_FEATURES)
    assert jnp.allclose(y_odd, y_ref[:M_odd], atol=2e-3, rtol=2e-3)

    # --- bf16-output training path (consumer is the L2-normalize branch) ----
    y_bf16 = jax.block_until_ready(
        linear_matrix(x, w_t_bf16, out_dtype=jnp.bfloat16))
    assert y_bf16.dtype == jnp.bfloat16
    # ~0.4% extra relative quantization from the bf16 output store.
    assert jnp.allclose(y_bf16.astype(jnp.float32), y_ref, atol=2e-2, rtol=2e-2)

    # TODO(synk): the rest of ExpCLIP_Train.forward (CLIP image encoder, BLIP-2
    # T5 text branch/tokenizer, logit_scale) has no Pallas equivalent here; the
    # L2 normalization of the projected image features stays in plain JAX:
    feat = y_bf16.astype(jnp.float32)
    img_feat = feat / jnp.linalg.norm(feat, axis=-1, keepdims=True)
    img_feat = jax.block_until_ready(img_feat)

    print("KERNEL_OK")
</pallas_src>

<mosaic_0001>
module attributes {stable_mosaic.version = 11 : i64} {
  func.func @_linear_kernel(%arg0: i32, %arg1: i32, %arg2: memref<8x512xf32, #tpu.memory_space<vmem>>, %arg3: memref<512x2048xbf16, #tpu.memory_space<vmem>>, %arg4: memref<8x2048xf32, #tpu.memory_space<vmem>>) attributes {dimension_semantics = [#tpu.dimension_semantics<parallel>, #tpu.dimension_semantics<parallel>], iteration_bounds = array<i64: 2, 1>, scalar_prefetch = 0 : i64, scratch_operands = 0 : i64, tpu.core_type = #tpu.core_type<tc>, window_params = [{transform_indices = @transform_0, window_bounds = array<i64: 8, 512>}, {transform_indices = @transform_1, window_bounds = array<i64: 512, 2048>}, {transform_indices = @transform_2, window_bounds = array<i64: 8, 2048>}]} {
    %c0 = arith.constant 0 : index
    %c0_0 = arith.constant 0 : index
    %0 = vector.load %arg2[%c0, %c0_0] : memref<8x512xf32, #tpu.memory_space<vmem>>, vector<8x512xf32>
    %1 = arith.truncf %0 : vector<8x512xf32> to vector<8x512xbf16>
    %c0_1 = arith.constant 0 : index
    %c0_2 = arith.constant 0 : index
    %2 = vector.load %arg3[%c0_1, %c0_2] : memref<512x2048xbf16, #tpu.memory_space<vmem>>, vector<512x2048xbf16>
    %cst = arith.constant dense<0.000000e+00> : vector<8x2048xf32>
    %3 = tpu.matmul %1, %2, %cst {dimension_numbers = #tpu.dot_dimension_numbers<[1], [0], [0], [1], [0, 0, 1, 1], [], []>} : vector<8x512xbf16>, vector<512x2048xbf16>, vector<8x2048xf32> -> vector<8x2048xf32>
    %c0_3 = arith.constant 0 : index
    %c0_4 = arith.constant 0 : index
    %4 = vector.load %arg4[%c0_3, %c0_4] : memref<8x2048xf32, #tpu.memory_space<vmem>>, vector<8x2048xf32>
    tpu.vector_store %arg4[%c0_3, %c0_4], %3 {strides = array<i32>} : memref<8x2048xf32, #tpu.memory_space<vmem>>, vector<8x2048xf32>,
    return
  }
  func.func @transform_0(%arg0: i32, %arg1: i32) -> (i32, i32) {
    %c0_i32 = arith.constant 0 : i32
    %c0_i32_0 = arith.constant 0 : i32
    return %arg1, %c0_i32 : i32, i32
  }
  func.func @transform_1(%arg0: i32, %arg1: i32) -> (i32, i32) {
    %c0_i32 = arith.constant 0 : i32
    %c0_i32_0 = arith.constant 0 : i32
    return %c0_i32, %arg0 : i32, i32
  }
  func.func @transform_2(%arg0: i32, %arg1: i32) -> (i32, i32) {
    %c0_i32 = arith.constant 0 : i32
    return %arg1, %arg0 : i32, i32
  }
}

</mosaic_0001>

<bundles_post_ra>
// kernel: tpu_custom_call.1
= control target key start
LH: loop header
LB: loop body
LE: loop exit
PB: predicated region body
PF: predicated region fallthrough
CT: control target
= control target key end

     0   :  { %7 = vsyncpa [#allocation3], 0  ;;  %s5580_s0 = inlined_call_operand.hbm [shape: f32[8,512], index: 0, kind: input, shape index: {}]   ;;  %s5581_s1 = inlined_call_operand.hbm [shape: bf16[512,4096], index: 1, kind: input, shape index: {}]   ;;  %s5582_s2 = inlined_call_operand.hbm [shape: f32[8,4096], index: 2, kind: output, shape index: {}]  }
   0x1   :  { %8 = vsyncpa [#allocation6], 0 }
   0x2   :  { %10 = vsyncpa [#allocation6 + $0x1], 0 }
   0x3   :  { %11 = vsyncpa [#allocation4], 0 }
   0x4   :  { %13 = vsyncpa [#allocation4 + $0x1], 0  ;;  %s4831_s9 = smov 0   ;;  %s4833_s10 = smov 0  }
   0x5   :  { %s4835_s11 = smov 0   ;;  %s4837_s12 = smov 0  }
   0x6   :  { %s4839_s13 = smov 0   ;;  %s4841_s14 = smov 0  }
   0x7 LB: > { %s4063_s15 = sadd.s32 4294967295, %s4808_s14   ;;  %s4064_s16 = sadd.s32 4294967294, %s4808_s14   ;;  %s4808_s14 = sphi %s4841_s14, %s19_s14   ;;  %s4804_s13 = sphi %s4839_s13, %s5601_s13   ;;  %s4800_s12 = sphi %s4837_s12, %s5600_s12   ;;  %s4796_s11 = sphi %s4835_s11, %s5599_s11   ;;  %s4792_s10 = sphi %s4833_s10, %s5598_s10   ;;  %s4788_s9 = sphi %s4831_s9, %s5597_s9  }
   0x8   : > { %s64_s17 = sadd.s32 1, %s4796_s11  ;;  %p71_p0 = scmp.ne.s32.totalorder %s4796_s11, %s4792_s10 }
   0x9   : > { %p72_p1 = scmp.eq.s32.totalorder %s4808_s14, 0  ;;  %p77_p2 = scmp.ne.s32.totalorder %s4792_s10, %s4788_s9 }
   0xa   : > { %p4869_p3 = scmp.eq.s32.totalorder %s4063_s15, 0  ;;  %p103_p4 = scmp.eq.s32.totalorder %s4063_s15, 1 }
   0xb   : > { %p4873_p5 = por %p72_p1, %p71_p0  ;;  %p109_p6 = scmp.eq.s32.totalorder %s4064_s16, 1 }
   0xc   : > { %p4879_p7 = por %p4869_p3, %p77_p2  ;;  %p4883_p8 = por %p103_p4, %p71_p0 }
   0xd   : > { %p4887_p9 = por %p109_p6, %p77_p2  ;;  %p4065_p10 = scmp.ge.s32.totalorder %s4808_s14, 1 }
   0xe   : > { %s5587_s20 = scalar_select %p4879_p7, 1, 0 }
   0xf   : > { %s5588_s21 = scalar_select %p4883_p8, 1, 0 }
  0x10   : > { %s5589_s22 = scalar_select %p4887_p9, 1, 0 }
  0x11   : > { %p116_p11 = scmp.lt.s32.totalorder %s4808_s14, 3  ;;  %s4810_s24 = smov [#allocation2]  }
  0x12   : > { %s132_s25 = sshll.u32 %s4810_s24, 4  ;;  %p4615_p1 = scmp.lt.s32.totalorder %s4808_s14, 2  ;;  %s133_s25 = int_to_ptr.vmem [resolvable:$true] %s132_s25 }
  0x13   : > { %p4894_p13 = pnand %p4065_p10, %p116_p11  ;;  %s31_s28 = sadd.s32 1, %s4804_s13 }
  0x14   : > { %p4903_p4 = pnand %p4615_p1, %p4873_p5  ;;  %p33_p6 = scmp.ge.s32.totalorder %s31_s28, 2 }
  0x15   : > { %p4602_p0 = pneg %p4894_p13  ;;  %s143_s29 = sand.u32 1, %s4796_s11  }
  0x16   : > { %s4681_s30 = scalar_lea.vmem %s133_s25, 512  ;;  %p4689_p8 = scmp.lt.s32.totalorder %s133_s25, %s133_s25 }
  0x17   : > { %p4909_p2 = pnand %p4602_p0, %p4869_p3  ;;  %p4682_p11 = scmp.ne.s32.totalorder %s133_s25, %s4681_s30 }
  0x18   : > { %p4690_p5 = scmp.lt.s32.totalorder %s4681_s30, %s4681_s30 }
  0x19   : > { %p4672_p10 = pneg %p4909_p2 }
  0x1a   : > { %p4691_p1 = por %p4690_p5, %p4689_p8 }
  0x1b   : > { %p4684_p12 = pnand %p4682_p11, %p4672_p10 }
  0x1d   : > { %p4685_p9 = pneg %p4684_p12 }
  0x1f   : > { %p4692_p7 = pnand %p4691_p1, %p4685_p9 }
  0x21   : > { %4695 = shalt.err (!%p4692_p7)
}
  0x22   : > { %4605 = dma.hbm_to_vmem [thread:$0]  (!%p4909_p2), %s5580_s0, 512, %s133_s25, [#allocation3]  }
  0x23   : > { %s5603_s28 = smov (%p33_p6, %s31_s28), 0  ;;  %s4068_s5 = sshll.u32 %s143_s29, 12 }
  0x24   : > { %s61_s6 = ssub.s32 %s4804_s13, %s5603_s28  ;;  %s4592_s7 = sshll.u32 %s4804_s13, 10 }
  0x25   : > { %p62_p12 = scmp.eq.s32.totalorder %s61_s6, 0  ;;  %s153_s16 = scalar_lea.hbm %s5581_s1, %s4592_s7 }
  0x26   : > { %s147_s19 = scalar_lea.vmem [#allocation5], %s4068_s5  ;;  %s144_s30 = scalar_lea.sflag [#allocation6], %s143_s29 }
  0x27   : > { %s154_s24 = sshll.u32 %s147_s19, 4  ;;  %p4698_p7 = pneg %p4903_p4  ;;  %s155_s24 = int_to_ptr.vmem [resolvable:$true] %s154_s24 }
  0x28   : > { %s4933_s27 = scalar_select %p62_p12, %s4796_s11, %s64_s17  }
  0x29   : > { %s4709_s25 = scalar_lea.vmem %s155_s24, 65536  ;;  %s4811_s3 = smov [#allocation5]  }
  0x2a   : > { %p4710_p8 = scmp.ne.s32.totalorder %s155_s24, %s4709_s25  ;;  %s4714_s4 = sshll.u32 %s4811_s3, 4  ;;  %s4715_s4 = int_to_ptr.vmem [resolvable:$false] %s4714_s4 }
  0x2b   : > { %s4716_s6 = scalar_lea.vmem %s4715_s4, 131072  ;;  %p4717_p2 = scmp.lt.s32.totalorder %s155_s24, %s4715_s4 }
  0x2c   : > { %p4712_p9 = pnand %p4710_p8, %p4698_p7  ;;  %p4718_p6 = scmp.lt.s32.totalorder %s4716_s6, %s4709_s25 }
  0x2e   : > { %p4713_p0 = pneg %p4712_p9  ;;  %p4719_p10 = por %p4718_p6, %p4717_p2 }
  0x30   : > { %p4720_p11 = pnand %p4719_p10, %p4713_p0 }
  0x32   : > { %4723 = shalt.err (!%p4720_p11)
}
  0x33   : > { %s4812_s5 = smov 2048   ;;  %s4813_s17 = smov 1024  }
  0x34   : > { %s4814_s7 = smov 64   ;;  %166 = sbr.rel (%p4894_p13) target bundleno = 791 (0x317), region = 28 }
  0x35   : > { %4609 = dma.hbm_to_vmem [thread:$0]  (!%p4903_p4), %s153_s16, 65536, %s155_s24, %s144_s30, %s4812_s5, %s4813_s17, %s4814_s7  }
  0x39   : > { %4775 = dma.done.wait (%p4869_p3), [#allocation3], 512  }
  0x3a   : > { %4777 = vsyncadd (%p4869_p3), [#allocation3], 4294966784  ;;  %s4946_s29 = sand.u32 1, %s4792_s10   ;;  %p5593_p4 = scmp.ne.s32.totalorder %s5587_s20, 0 }
  0x3b   : > { %s4073_s8 = sshll.u32 %s4946_s29, 12  ;;  %s173_s15 = scalar_lea.sflag [#allocation6], %s4946_s29 }
  0x3c   : > { %s4950_s19 = scalar_lea.vmem [#allocation5], %s4073_s8 }
  0x3d   : > { %4779 = dma.done.wait (%p5593_p4), %s173_s15, 65536  }
  0x3e   : > { %4781 = vsyncadd (%p5593_p4), %s173_s15, 4294901760  ;;  %v319_v0 = vld [vmem:[%s4950_s19 + $0x380] sm:$0xff]  ;;  %v200_v53 = vld [vmem:[#allocation2 + $0x8] sm:$0xff]  ;;  %s4074_s18 = sshll.u32 %s4946_s29, 7  ;;  %s4593_s23 = sshll.u32 %s4800_s12, 11 }
  0x3f   : > { %v327_v1 = vld [vmem:[%s4950_s19 + $0x3c0] sm:$0xff]  ;;  %v202_v54 = vld [vmem:[#allocation2 + $0x18] sm:$0xff]  ;;  %v4986_v58 = vpack.c.bf16 %v200_v53, %v200_v53  ;;  %s5252_s20 = scalar_lea.vmem [#allocation7], %s4074_s18  ;;  %s5531_s30 = scalar_lea.hbm %s5582_s2, %s4593_s23 }
  0x40   : > { %v575_v2 = vld [vmem:[%s4950_s19 + $0xb80] sm:$0xff]  ;;  %v4188_v3 = vcombine.high %v319_v0, %v327_v1  ;;  %v4187_v5 = vcombine.low %v319_v0, %v327_v1  ;;  %v4988_v59 = vpack.c.bf16 %v202_v54, %v202_v54  ;;  %s3968_s26 = sshll.u32 %s5252_s20, 4  ;;  %s3952_s12 = scalar_lea.sflag [#allocation4], %s4946_s29  ;;  %s5533_s26 = int_to_ptr.vmem [resolvable:$true] %s3968_s26 }
  0x41   : > { %v583_v4 = vld [vmem:[%s4950_s19 + $0xbc0] sm:$0xff]  ;;  %3311 = vmatprep.mubr.bf16.mxu0 %v4986_v58  ;;  %s4724_s25 = scalar_lea.vmem %s5533_s26, 2048  ;;  %p5594_p13 = scmp.ne.s32.totalorder %s5588_s21, 0 }
  0x42   : > { %v303_v6 = vld [vmem:[%s4950_s19 + $0x300] sm:$0xff]  ;;  %v4444_v8 = vcombine.high %v575_v2, %v583_v4  ;;  %v4443_v9 = vcombine.low %v575_v2, %v583_v4  ;;  %3279 = vmatprep.subr.bf16.mxu0 %v4188_v3  ;;  %3352 = vmatprep.mubr.bf16.mxu1 %v4988_v59  ;;  %p4725_p3 = scmp.ne.s32.totalorder %s5533_s26, %s4724_s25  ;;  %s4815_s3 = smov [#allocation7]  }
  0x43   : > { %v311_v7 = vld [vmem:[%s4950_s19 + $0x340] sm:$0xff]  ;;  %3280 = vmatpush1.bf16.msra.mxu0 %v4187_v5  ;;  %s4728_s4 = sshll.u32 %s4815_s3, 4  ;;  %s4729_s4 = int_to_ptr.vmem [resolvable:$false] %s4728_s4 }
  0x44   : > { %v4172_v10 = vcombine.high %v303_v6, %v311_v7  ;;  %v559_v11 = vld [vmem:[%s4950_s19 + $0xb00] sm:$0xff]  ;;  %3320 = vmatprep.subr.bf16.mxu1 %v4444_v8  ;;  %v4171_v18 = vcombine.low %v303_v6, %v311_v7  ;;  %p4726_p5 = pnand %p4725_p3, %p5594_p13  ;;  %s4730_s6 = scalar_lea.vmem %s4729_s4, 4096 }
  0x45   : > { %v567_v12 = vld [vmem:[%s4950_s19 + $0xb40] sm:$0xff]  ;;  %3321 = vmatpush1.bf16.msra.mxu1 %v4443_v9  ;;  %p4731_p12 = scmp.lt.s32.totalorder %s5533_s26, %s4729_s4  ;;  %p4732_p7 = scmp.lt.s32.totalorder %s4730_s6, %s4724_s25 }
  0x46   : > { %v287_v13 = vld [vmem:[%s4950_s19 + $0x280] sm:$0xff]  ;;  %v4428_v14 = vcombine.high %v559_v11, %v567_v12  ;;  %3281 = vmatprep.subr.bf16.mxu0 %v4172_v10  ;;  %v4427_v19 = vcombine.low %v559_v11, %v567_v12  ;;  %p4727_p1 = pneg %p4726_p5 }
  0x47   : > { %v295_v15 = vld [vmem:[%s4950_s19 + $0x2c0] sm:$0xff]  ;;  %3282 = vmatpush1.bf16.msra.mxu0 %v4171_v18  ;;  %p4733_p8 = por %p4732_p7, %p4731_p12 }
  0x48   : > { %v543_v16 = vld [vmem:[%s4950_s19 + $0xa80] sm:$0xff]  ;;  %v4156_v20 = vcombine.high %v287_v13, %v295_v15  ;;  %3322 = vmatprep.subr.bf16.mxu1 %v4428_v14  ;;  %v4155_v26 = vcombine.low %v287_v13, %v295_v15 }
  0x49   : > { %v551_v17 = vld [vmem:[%s4950_s19 + $0xac0] sm:$0xff]  ;;  %3323 = vmatpush1.bf16.msra.mxu1 %v4427_v19  ;;  %p4734_p9 = pnand %p4733_p8, %p4727_p1 }
  0x4a   : > { %v4412_v21 = vcombine.high %v543_v16, %v551_v17  ;;  %v271_v22 = vld [vmem:[%s4950_s19 + $0x200] sm:$0xff]  ;;  %3283 = vmatprep.subr.bf16.mxu0 %v4156_v20  ;;  %v4411_v27 = vcombine.low %v543_v16, %v551_v17 }
  0x4b   : > { %v279_v23 = vld [vmem:[%s4950_s19 + $0x240] sm:$0xff]  ;;  %3284 = vmatpush1.bf16.msra.mxu0 %v4155_v26 }
  0x4c   : > { %v527_v24 = vld [vmem:[%s4950_s19 + $0xa00] sm:$0xff]  ;;  %v4140_v28 = vcombine.high %v271_v22, %v279_v23  ;;  %3324 = vmatprep.subr.bf16.mxu1 %v4412_v21  ;;  %v4139_v34 = vcombine.low %v271_v22, %v279_v23 }
  0x4d   : > { %v535_v25 = vld [vmem:[%s4950_s19 + $0xa40] sm:$0xff]  ;;  %3325 = vmatpush1.bf16.msra.mxu1 %v4411_v27 }
  0x4e   : > { %v4396_v29 = vcombine.high %v527_v24, %v535_v25  ;;  %v255_v30 = vld [vmem:[%s4950_s19 + $0x180] sm:$0xff]  ;;  %3285 = vmatprep.subr.bf16.mxu0 %v4140_v28  ;;  %v4395_v35 = vcombine.low %v527_v24, %v535_v25 }
  0x4f   : > { %v263_v31 = vld [vmem:[%s4950_s19 + $0x1c0] sm:$0xff]  ;;  %3286 = vmatpush1.bf16.msra.mxu0 %v4139_v34 }
  0x50   : > { %v511_v32 = vld [vmem:[%s4950_s19 + $0x980] sm:$0xff]  ;;  %v4124_v36 = vcombine.high %v255_v30, %v263_v31  ;;  %3326 = vmatprep.subr.bf16.mxu1 %v4396_v29  ;;  %v4123_v42 = vcombine.low %v255_v30, %v263_v31 }
  0x51   : > { %v519_v33 = vld [vmem:[%s4950_s19 + $0x9c0] sm:$0xff]  ;;  %3327 = vmatpush1.bf16.msra.mxu1 %v4395_v35 }
  0x52   : > { %v4380_v37 = vcombine.high %v511_v32, %v519_v33  ;;  %v239_v38 = vld [vmem:[%s4950_s19 + $0x100] sm:$0xff]  ;;  %3287 = vmatprep.subr.bf16.mxu0 %v4124_v36  ;;  %v4379_v43 = vcombine.low %v511_v32, %v519_v33 }
  0x53   : > { %v247_v39 = vld [vmem:[%s4950_s19 + $0x140] sm:$0xff]  ;;  %3288 = vmatpush1.bf16.msra.mxu0 %v4123_v42 }
  0x54   : > { %v495_v40 = vld [vmem:[%s4950_s19 + $0x900] sm:$0xff]  ;;  %v4108_v44 = vcombine.high %v239_v38, %v247_v39  ;;  %3328 = vmatprep.subr.bf16.mxu1 %v4380_v37  ;;  %v4107_v50 = vcombine.low %v239_v38, %v247_v39 }
  0x55   : > { %v503_v41 = vld [vmem:[%s4950_s19 + $0x940] sm:$0xff]  ;;  %3329 = vmatpush1.bf16.msra.mxu1 %v4379_v43 }
  0x56   : > { %v4364_v45 = vcombine.high %v495_v40, %v503_v41  ;;  %v223_v46 = vld [vmem:[%s4950_s19 + $0x80] sm:$0xff]  ;;  %3289 = vmatprep.subr.bf16.mxu0 %v4108_v44  ;;  %v4363_v51 = vcombine.low %v495_v40, %v503_v41 }
  0x57   : > { %v231_v47 = vld [vmem:[%s4950_s19 + $0xc0] sm:$0xff]  ;;  %3290 = vmatpush1.bf16.msra.mxu0 %v4107_v50 }
  0x58   : > { %v479_v48 = vld [vmem:[%s4950_s19 + $0x880] sm:$0xff]  ;;  %v4092_v52 = vcombine.high %v223_v46, %v231_v47  ;;  %3330 = vmatprep.subr.bf16.mxu1 %v4364_v45  ;;  %v4091_v62 = vcombine.low %v223_v46, %v231_v47 }
  0x59   : > { %v487_v49 = vld [vmem:[%s4950_s19 + $0x8c0] sm:$0xff]  ;;  %3331 = vmatpush1.bf16.msra.mxu1 %v4363_v51 }
  0x5a   : > { %v4348_v55 = vcombine.high %v479_v48, %v487_v49  ;;  %v207_v56 = vld [vmem:[%s4950_s19] sm:$0xff]  ;;  %3291 = vmatprep.subr.bf16.mxu0 %v4092_v52  ;;  %v4347_v63 = vcombine.low %v479_v48, %v487_v49 }
  0x5b   : > { %v215_v57 = vld [vmem:[%s4950_s19 + $0x40] sm:$0xff]  ;;  %3292 = vmatpush1.bf16.msra.mxu0 %v4091_v62 }
  0x5c   : > { %v463_v60 = vld [vmem:[%s4950_s19 + $0x800] sm:$0xff]  ;;  %v4076_v0 = vcombine.high %v207_v56, %v215_v57  ;;  %3332 = vmatprep.subr.bf16.mxu1 %v4348_v55  ;;  %v4075_v6 = vcombine.low %v207_v56, %v215_v57 }
  0x5d   : > { %v471_v61 = vld [vmem:[%s4950_s19 + $0x840] sm:$0xff]  ;;  %3333 = vmatpush1.bf16.msra.mxu1 %v4347_v63 }
  0x5e   : > { %v4332_v1 = vcombine.high %v463_v60, %v471_v61  ;;  %v447_v2 = vld [vmem:[%s4950_s19 + $0x780] sm:$0xff]  ;;  %3293 = vmatprep.subr.bf16.mxu0 %v4076_v0  ;;  %v4331_v7 = vcombine.low %v463_v60, %v471_v61 }
  0x5f   : > { %v455_v3 = vld [vmem:[%s4950_s19 + $0x7c0] sm:$0xff]  ;;  %3294 = vmatpush1.bf16.msra.mxu0 %v4075_v6  ;;  %v576_v6 = vld [vmem:[%s4950_s19 + $0xb88] sm:$0xff] }
  0x60   : > { %v703_v4 = vld [vmem:[%s4950_s19 + $0xf80] sm:$0xff]  ;;  %v4316_v8 = vcombine.high %v447_v2, %v455_v3  ;;  %3334 = vmatprep.subr.bf16.mxu1 %v4332_v1  ;;  %v4315_v14 = vcombine.low %v447_v2, %v455_v3 }
  0x61   : > { %v711_v5 = vld [vmem:[%s4950_s19 + $0xfc0] sm:$0xff]  ;;  %3335 = vmatpush1.bf16.msra.mxu1 %v4331_v7  ;;  %v584_v7 = vld [vmem:[%s4950_s19 + $0xbc8] sm:$0xff] }
  0x62   : > { %v4572_v9 = vcombine.high %v703_v4, %v711_v5  ;;  %v431_v10 = vld [vmem:[%s4950_s19 + $0x700] sm:$0xff]  ;;  %3295 = vmatprep.subr.bf16.mxu0 %v4316_v8  ;;  %v4571_v15 = vcombine.low %v703_v4, %v711_v5  ;;  %v320_v4 = vld [vmem:[%s4950_s19 + $0x388] sm:$0xff] }
  0x63   : > { %v439_v11 = vld [vmem:[%s4950_s19 + $0x740] sm:$0xff]  ;;  %3296 = vmatpush2.bf16.msra.mxu0 %v4315_v14  ;;  %v328_v5 = vld [vmem:[%s4950_s19 + $0x3c8] sm:$0xff] }
  0x64   : > { %v687_v12 = vld [vmem:[%s4950_s19 + $0xf00] sm:$0xff]  ;;  %v4300_v16 = vcombine.high %v431_v10, %v439_v11  ;;  %3336 = vmatprep.subr.bf16.mxu1 %v4572_v9  ;;  %v4299_v22 = vcombine.low %v431_v10, %v439_v11  ;;  %v201_v11 = vld [vmem:[#allocation2 + $0x10] sm:$0xff]  ;;  %v304_v14 = vld [vmem:[%s4950_s19 + $0x308] sm:$0xff] }
  0x65   : > { %v695_v13 = vld [vmem:[%s4950_s19 + $0xf40] sm:$0xff]  ;;  %3337 = vmatpush2.bf16.msra.mxu1 %v4571_v15  ;;  %v312_v15 = vld [vmem:[%s4950_s19 + $0x348] sm:$0xff] }
  0x66   : > { %v4556_v17 = vcombine.high %v687_v12, %v695_v13  ;;  %v415_v18 = vld [vmem:[%s4950_s19 + $0x680] sm:$0xff]  ;;  %3297 = vmatprep.subr.bf16.mxu0 %v4300_v16  ;;  %v4555_v23 = vcombine.low %v687_v12, %v695_v13  ;;  %v4190_v12 = vcombine.high %v320_v4, %v328_v5  ;;  %v4446_v13 = vcombine.high %v576_v6, %v584_v7 }
  0x67   : > { %v423_v19 = vld [vmem:[%s4950_s19 + $0x6c0] sm:$0xff]  ;;  %3298 = vmatpush2.bf16.msra.mxu0 %v4299_v22  ;;  %v4174_v22 = vcombine.high %v304_v14, %v312_v15 }
  0x68   : > { %v671_v20 = vld [vmem:[%s4950_s19 + $0xe80] sm:$0xff]  ;;  %v4284_v24 = vcombine.high %v415_v18, %v423_v19  ;;  %3338 = vmatprep.subr.bf16.mxu1 %v4556_v17  ;;  %v4283_v30 = vcombine.low %v415_v18, %v423_v19  ;;  %v560_v17 = vld [vmem:[%s4950_s19 + $0xb08] sm:$0xff]  ;;  %v5036_v19 = vpack.c.bf16 %v201_v11, %v201_v11 }
  0x69   : > { %v679_v21 = vld [vmem:[%s4950_s19 + $0xec0] sm:$0xff]  ;;  %3339 = vmatpush2.bf16.msra.mxu1 %v4555_v23  ;;  %v568_v18 = vld [vmem:[%s4950_s19 + $0xb48] sm:$0xff] }
  0x6a   : > { %v4540_v25 = vcombine.high %v671_v20, %v679_v21  ;;  %v399_v26 = vld [vmem:[%s4950_s19 + $0x600] sm:$0xff]  ;;  %3299 = vmatprep.subr.bf16.mxu0 %v4284_v24  ;;  %v4539_v31 = vcombine.low %v671_v20, %v679_v21  ;;  %v4189_v20 = vcombine.low %v320_v4, %v328_v5  ;;  %v4445_v21 = vcombine.low %v576_v6, %v584_v7  ;;  %v288_v24 = vld [vmem:[%s4950_s19 + $0x288] sm:$0xff] }
  0x6b   : > { %v407_v27 = vld [vmem:[%s4950_s19 + $0x640] sm:$0xff]  ;;  %3300 = vmatpush2.bf16.msra.mxu0 %v4283_v30  ;;  %v4430_v23 = vcombine.high %v560_v17, %v568_v18  ;;  %v464_v4 = vld [vmem:[%s4950_s19 + $0x808] sm:$0xff] }
  0x6c   : > { %v655_v28 = vld [vmem:[%s4950_s19 + $0xe00] sm:$0xff]  ;;  %v4268_v32 = vcombine.high %v399_v26, %v407_v27  ;;  %3340 = vmatprep.subr.bf16.mxu1 %v4540_v25  ;;  %v4267_v38 = vcombine.low %v399_v26, %v407_v27  ;;  %v296_v25 = vld [vmem:[%s4950_s19 + $0x2c8] sm:$0xff] }
  0x6d   : > { %v663_v29 = vld [vmem:[%s4950_s19 + $0xe40] sm:$0xff]  ;;  %3341 = vmatpush2.bf16.msra.mxu1 %v4539_v31  ;;  %v544_v26 = vld [vmem:[%s4950_s19 + $0xa88] sm:$0xff]  ;;  %v4158_v30 = vcombine.high %v288_v24, %v296_v25 }
  0x6e   : > { %v4524_v33 = vcombine.high %v655_v28, %v663_v29  ;;  %v383_v34 = vld [vmem:[%s4950_s19 + $0x580] sm:$0xff]  ;;  %3301 = vmatprep.subr.bf16.mxu0 %v4268_v32  ;;  %v4523_v39 = vcombine.low %v655_v28, %v663_v29  ;;  %v552_v27 = vld [vmem:[%s4950_s19 + $0xac8] sm:$0xff]  ;;  %v4173_v28 = vcombine.low %v304_v14, %v312_v15  ;;  %v4429_v29 = vcombine.low %v560_v17, %v568_v18 }
  0x6f   : > { %v391_v35 = vld [vmem:[%s4950_s19 + $0x5c0] sm:$0xff]  ;;  %3302 = vmatpush2.bf16.msra.mxu0 %v4267_v38  ;;  %v4414_v31 = vcombine.high %v544_v26, %v552_v27  ;;  %v272_v32 = vld [vmem:[%s4950_s19 + $0x208] sm:$0xff] }
  0x70   : > { %v639_v36 = vld [vmem:[%s4950_s19 + $0xd80] sm:$0xff]  ;;  %v4252_v40 = vcombine.high %v383_v34, %v391_v35  ;;  %3342 = vmatprep.subr.bf16.mxu1 %v4524_v33  ;;  %v4251_v46 = vcombine.low %v383_v34, %v391_v35  ;;  %v280_v33 = vld [vmem:[%s4950_s19 + $0x248] sm:$0xff] }
  0x71   : > { %v647_v37 = vld [vmem:[%s4950_s19 + $0xdc0] sm:$0xff]  ;;  %3343 = vmatpush2.bf16.msra.mxu1 %v4523_v39  ;;  %v528_v34 = vld [vmem:[%s4950_s19 + $0xa08] sm:$0xff]  ;;  %v4142_v38 = vcombine.high %v272_v32, %v280_v33 }
  0x72   : > { %v4508_v41 = vcombine.high %v639_v36, %v647_v37  ;;  %v367_v42 = vld [vmem:[%s4950_s19 + $0x500] sm:$0xff]  ;;  %3303 = vmatprep.subr.bf16.mxu0 %v4252_v40  ;;  %v4507_v47 = vcombine.low %v639_v36, %v647_v37  ;;  %v536_v35 = vld [vmem:[%s4950_s19 + $0xa48] sm:$0xff]  ;;  %v4157_v36 = vcombine.low %v288_v24, %v296_v25  ;;  %v4413_v37 = vcombine.low %v544_v26, %v552_v27 }
  0x73   : > { %v375_v43 = vld [vmem:[%s4950_s19 + $0x540] sm:$0xff]  ;;  %3304 = vmatpush2.bf16.msra.mxu0 %v4251_v46  ;;  %v4398_v39 = vcombine.high %v528_v34, %v536_v35  ;;  %v256_v40 = vld [vmem:[%s4950_s19 + $0x188] sm:$0xff] }
  0x74   : > { %v623_v44 = vld [vmem:[%s4950_s19 + $0xd00] sm:$0xff]  ;;  %v4236_v48 = vcombine.high %v367_v42, %v375_v43  ;;  %3344 = vmatprep.subr.bf16.mxu1 %v4508_v41  ;;  %v4235_v54 = vcombine.low %v367_v42, %v375_v43  ;;  %v264_v41 = vld [vmem:[%s4950_s19 + $0x1c8] sm:$0xff] }
  0x75   : > { %v631_v45 = vld [vmem:[%s4950_s19 + $0xd40] sm:$0xff]  ;;  %3345 = vmatpush2.bf16.msra.mxu1 %v4507_v47  ;;  %v512_v42 = vld [vmem:[%s4950_s19 + $0x988] sm:$0xff]  ;;  %v4126_v46 = vcombine.high %v256_v40, %v264_v41 }
  0x76   : > { %v4492_v49 = vcombine.high %v623_v44, %v631_v45  ;;  %v351_v50 = vld [vmem:[%s4950_s19 + $0x480] sm:$0xff]  ;;  %3305 = vmatprep.subr.bf16.mxu0 %v4236_v48  ;;  %v4491_v55 = vcombine.low %v623_v44, %v631_v45  ;;  %v520_v43 = vld [vmem:[%s4950_s19 + $0x9c8] sm:$0xff]  ;;  %v4141_v44 = vcombine.low %v272_v32, %v280_v33  ;;  %v4397_v45 = vcombine.low %v528_v34, %v536_v35 }
  0x77   : > { %v359_v51 = vld [vmem:[%s4950_s19 + $0x4c0] sm:$0xff]  ;;  %3306 = vmatpush2.bf16.msra.mxu0 %v4235_v54  ;;  %v4382_v47 = vcombine.high %v512_v42, %v520_v43  ;;  %v240_v48 = vld [vmem:[%s4950_s19 + $0x108] sm:$0xff] }
  0x78   : > { %v607_v52 = vld [vmem:[%s4950_s19 + $0xc80] sm:$0xff]  ;;  %v4220_v56 = vcombine.high %v351_v50, %v359_v51  ;;  %3346 = vmatprep.subr.bf16.mxu1 %v4492_v49  ;;  %v4219_v0 = vcombine.low %v351_v50, %v359_v51  ;;  %v248_v49 = vld [vmem:[%s4950_s19 + $0x148] sm:$0xff] }
  0x79   : > { %v615_v53 = vld [vmem:[%s4950_s19 + $0xcc0] sm:$0xff]  ;;  %3347 = vmatpush2.bf16.msra.mxu1 %v4491_v55  ;;  %v496_v50 = vld [vmem:[%s4950_s19 + $0x908] sm:$0xff]  ;;  %v4110_v54 = vcombine.high %v240_v48, %v248_v49 }
  0x7a   : > { %v4476_v57 = vcombine.high %v607_v52, %v615_v53  ;;  %v335_v60 = vld [vmem:[%s4950_s19 + $0x400] sm:$0xff]  ;;  %3307 = vmatprep.subr.bf16.mxu0 %v4220_v56  ;;  %v4475_v1 = vcombine.low %v607_v52, %v615_v53  ;;  %v504_v51 = vld [vmem:[%s4950_s19 + $0x948] sm:$0xff]  ;;  %v4125_v52 = vcombine.low %v256_v40, %v264_v41  ;;  %v4381_v53 = vcombine.low %v512_v42, %v520_v43 }
  0x7b   : > { %v343_v61 = vld [vmem:[%s4950_s19 + $0x440] sm:$0xff]  ;;  %3308 = vmatpush2.bf16.msra.mxu0 %v4219_v0  ;;  %v4366_v55 = vcombine.high %v496_v50, %v504_v51  ;;  %v224_v56 = vld [vmem:[%s4950_s19 + $0x88] sm:$0xff] }
  0x7c   : > { %v591_v62 = vld [vmem:[%s4950_s19 + $0xc00] sm:$0xff]  ;;  %v4204_v2 = vcombine.high %v335_v60, %v343_v61  ;;  %3348 = vmatprep.subr.bf16.mxu1 %v4476_v57  ;;  %v4203_v8 = vcombine.low %v335_v60, %v343_v61  ;;  %v232_v57 = vld [vmem:[%s4950_s19 + $0xc8] sm:$0xff] }
  0x7d   : > { %v599_v63 = vld [vmem:[%s4950_s19 + $0xc40] sm:$0xff]  ;;  %3349 = vmatpush2.bf16.msra.mxu1 %v4475_v1  ;;  %v480_v60 = vld [vmem:[%s4950_s19 + $0x888] sm:$0xff]  ;;  %v4094_v0 = vcombine.high %v224_v56, %v232_v57  ;;  %v4093_v6 = vcombine.low %v224_v56, %v232_v57 }
  0x7e   : > { %v4460_v3 = vcombine.high %v591_v62, %v599_v63  ;;  %v199_v9 = vld [vmem:[#allocation2] sm:$0xff]  ;;  %3309 = vmatprep.subr.bf16.mxu0 %v4204_v2  ;;  %v4459_v10 = vcombine.low %v591_v62, %v599_v63  ;;  %v488_v61 = vld [vmem:[%s4950_s19 + $0x8c8] sm:$0xff]  ;;  %v4109_v62 = vcombine.low %v240_v48, %v248_v49  ;;  %v4365_v63 = vcombine.low %v496_v50, %v504_v51 }
  0x7f   : > { %v5032_v16 = vpack.c.bf16 %v199_v9, %v199_v9  ;;  %3310 = vmatpush2.bf16.msra.mxu0 %v4203_v8  ;;  %v4350_v1 = vcombine.high %v480_v60, %v488_v61  ;;  %v208_v2 = vld [vmem:[%s4950_s19 + $0x8] sm:$0xff]  ;;  %v4349_v7 = vcombine.low %v480_v60, %v488_v61 }
  0x80   : > { %3350 = vmatprep.subr.bf16.mxu1 %v4460_v3  ;;  %3361 = vmatprep.subr.bf16.mxu0 %v4190_v12  ;;  %v216_v3 = vld [vmem:[%s4950_s19 + $0x48] sm:$0xff] }
  0x81   : > { %3351 = vmatpush2.bf16.msra.mxu1 %v4459_v10  ;;  %v472_v5 = vld [vmem:[%s4950_s19 + $0x848] sm:$0xff]  ;;  %v4078_v8 = vcombine.high %v208_v2, %v216_v3  ;;  %v4077_v14 = vcombine.low %v208_v2, %v216_v3 }
  0x82   : > { %3402 = vmatprep.subr.bf16.mxu1 %v4446_v13  ;;  %3312 = vmatmul.mubr.bf16.vlgmr.msra.gmra.mxu0 %v5032_v16  ;;  %v4334_v9 = vcombine.high %v464_v4, %v472_v5  ;;  %v448_v10 = vld [vmem:[%s4950_s19 + $0x788] sm:$0xff]  ;;  %v4333_v15 = vcombine.low %v464_v4, %v472_v5 }
  0x83   : > { %3362 = vmatpush1.bf16.msra.mxu0 %v4189_v20  ;;  %3393 = vmatprep.mubr.bf16.mxu0 %v4986_v58  ;;  %v456_v11 = vld [vmem:[%s4950_s19 + $0x7c8] sm:$0xff] }
  0x84   : > { %3353 = vmatmul.mubr.bf16.vlgmr.msra.gmra.mxu1 %v5036_v19  ;;  %3363 = vmatprep.subr.bf16.mxu0 %v4174_v22  ;;  %v704_v12 = vld [vmem:[%s4950_s19 + $0xf88] sm:$0xff]  ;;  %v4318_v17 = vcombine.high %v448_v10, %v456_v11  ;;  %v4317_v24 = vcombine.low %v448_v10, %v456_v11 }
  0x85   : > { %3403 = vmatpush1.bf16.msra.mxu1 %v4445_v21  ;;  %3434 = vmatprep.mubr.bf16.mxu1 %v4988_v59  ;;  %v712_v13 = vld [vmem:[%s4950_s19 + $0xfc8] sm:$0xff] }
  0x86   : > { %3404 = vmatprep.subr.bf16.mxu1 %v4430_v23  ;;  %v4574_v18 = vcombine.high %v704_v12, %v712_v13  ;;  %v432_v20 = vld [vmem:[%s4950_s19 + $0x708] sm:$0xff]  ;;  %v4573_v25 = vcombine.low %v704_v12, %v712_v13 }
  0x87   : > { %3364 = vmatpush1.bf16.msra.mxu0 %v4173_v28  ;;  %v440_v21 = vld [vmem:[%s4950_s19 + $0x748] sm:$0xff] }
  0x88   : > { %3365 = vmatprep.subr.bf16.mxu0 %v4158_v30  ;;  %v688_v22 = vld [vmem:[%s4950_s19 + $0xf08] sm:$0xff]  ;;  %v4302_v26 = vcombine.high %v432_v20, %v440_v21  ;;  %v4301_v32 = vcombine.low %v432_v20, %v440_v21 }
  0x89   : > { %3405 = vmatpush1.bf16.msra.mxu1 %v4429_v29  ;;  %v696_v23 = vld [vmem:[%s4950_s19 + $0xf48] sm:$0xff] }
  0x8a   : > { %3406 = vmatprep.subr.bf16.mxu1 %v4414_v31  ;;  %v4558_v27 = vcombine.high %v688_v22, %v696_v23  ;;  %v416_v28 = vld [vmem:[%s4950_s19 + $0x688] sm:$0xff]  ;;  %v4557_v33 = vcombine.low %v688_v22, %v696_v23 }
  0x8b   : > { %3366 = vmatpush1.bf16.msra.mxu0 %v4157_v36  ;;  %v424_v29 = vld [vmem:[%s4950_s19 + $0x6c8] sm:$0xff] }
  0x8c   : > { %3367 = vmatprep.subr.bf16.mxu0 %v4142_v38  ;;  %v672_v30 = vld [vmem:[%s4950_s19 + $0xe88] sm:$0xff]  ;;  %v4286_v34 = vcombine.high %v416_v28, %v424_v29  ;;  %v4285_v40 = vcombine.low %v416_v28, %v424_v29 }
  0x8d   : > { %3407 = vmatpush1.bf16.msra.mxu1 %v4413_v37  ;;  %v680_v31 = vld [vmem:[%s4950_s19 + $0xec8] sm:$0xff] }
  0x8e   : > { %3408 = vmatprep.subr.bf16.mxu1 %v4398_v39  ;;  %v4542_v35 = vcombine.high %v672_v30, %v680_v31  ;;  %v400_v36 = vld [vmem:[%s4950_s19 + $0x608] sm:$0xff]  ;;  %v4541_v41 = vcombine.low %v672_v30, %v680_v31 }
  0x8f   : > { %3368 = vmatpush1.bf16.msra.mxu0 %v4141_v44  ;;  %v408_v37 = vld [vmem:[%s4950_s19 + $0x648] sm:$0xff] }
  0x90   : > { %3369 = vmatprep.subr.bf16.mxu0 %v4126_v46  ;;  %v656_v38 = vld [vmem:[%s4950_s19 + $0xe08] sm:$0xff]  ;;  %v4270_v42 = vcombine.high %v400_v36, %v408_v37  ;;  %v4269_v48 = vcombine.low %v400_v36, %v408_v37 }
  0x91   : > { %3409 = vmatpush1.bf16.msra.mxu1 %v4397_v45  ;;  %v664_v39 = vld [vmem:[%s4950_s19 + $0xe48] sm:$0xff] }
  0x92   : > { %3410 = vmatprep.subr.bf16.mxu1 %v4382_v47  ;;  %v4526_v43 = vcombine.high %v656_v38, %v664_v39  ;;  %v384_v44 = vld [vmem:[%s4950_s19 + $0x588] sm:$0xff]  ;;  %v4525_v49 = vcombine.low %v656_v38, %v664_v39 }
  0x93   : > { %3370 = vmatpush1.bf16.msra.mxu0 %v4125_v52  ;;  %v392_v45 = vld [vmem:[%s4950_s19 + $0x5c8] sm:$0xff] }
  0x94   : > { %3371 = vmatprep.subr.bf16.mxu0 %v4110_v54  ;;  %v640_v46 = vld [vmem:[%s4950_s19 + $0xd88] sm:$0xff]  ;;  %v4254_v50 = vcombine.high %v384_v44, %v392_v45  ;;  %v4253_v56 = vcombine.low %v384_v44, %v392_v45 }
  0x95   : > { %3411 = vmatpush1.bf16.msra.mxu1 %v4381_v53  ;;  %v648_v47 = vld [vmem:[%s4950_s19 + $0xdc8] sm:$0xff] }
  0x96   : > { %3412 = vmatprep.subr.bf16.mxu1 %v4366_v55  ;;  %v4510_v51 = vcombine.high %v640_v46, %v648_v47  ;;  %v368_v52 = vld [vmem:[%s4950_s19 + $0x508] sm:$0xff]  ;;  %v4509_v57 = vcombine.low %v640_v46, %v648_v47 }
  0x97   : > { %3372 = vmatpush1.bf16.msra.mxu0 %v4109_v62  ;;  %v376_v53 = vld [vmem:[%s4950_s19 + $0x548] sm:$0xff] }
  0x98   : > { %3373 = vmatprep.subr.bf16.mxu0 %v4094_v0  ;;  %v624_v54 = vld [vmem:[%s4950_s19 + $0xd08] sm:$0xff]  ;;  %v4238_v60 = vcombine.high %v368_v52, %v376_v53  ;;  %v4237_v2 = vcombine.low %v368_v52, %v376_v53 }
  0x99   : > { %3413 = vmatpush1.bf16.msra.mxu1 %v4365_v63  ;;  %v632_v55 = vld [vmem:[%s4950_s19 + $0xd48] sm:$0xff] }
  0x9a   : > { %3414 = vmatprep.subr.bf16.mxu1 %v4350_v1  ;;  %v4494_v61 = vcombine.high %v624_v54, %v632_v55  ;;  %v352_v62 = vld [vmem:[%s4950_s19 + $0x488] sm:$0xff]  ;;  %v4493_v3 = vcombine.low %v624_v54, %v632_v55 }
  0x9b   : > { %3374 = vmatpush1.bf16.msra.mxu0 %v4093_v6  ;;  %v360_v63 = vld [vmem:[%s4950_s19 + $0x4c8] sm:$0xff] }
  0x9c   : > { %3375 = vmatprep.subr.bf16.mxu0 %v4078_v8  ;;  %v608_v0 = vld [vmem:[%s4950_s19 + $0xc88] sm:$0xff]  ;;  %v4222_v4 = vcombine.high %v352_v62, %v360_v63  ;;  %v4221_v10 = vcombine.low %v352_v62, %v360_v63 }
  0x9d   : > { %3415 = vmatpush1.bf16.msra.mxu1 %v4349_v7  ;;  %v616_v1 = vld [vmem:[%s4950_s19 + $0xcc8] sm:$0xff] }
  0x9e   : > { %3416 = vmatprep.subr.bf16.mxu1 %v4334_v9  ;;  %v4478_v5 = vcombine.high %v608_v0, %v616_v1  ;;  %v336_v6 = vld [vmem:[%s4950_s19 + $0x408] sm:$0xff]  ;;  %v4477_v11 = vcombine.low %v608_v0, %v616_v1 }
  0x9f   : > { %3376 = vmatpush1.bf16.msra.mxu0 %v4077_v14  ;;  %v344_v7 = vld [vmem:[%s4950_s19 + $0x448] sm:$0xff]  ;;  %v321_v14 = vld [vmem:[%s4950_s19 + $0x390] sm:$0xff] }
  0xa0   : > { %3377 = vmatprep.subr.bf16.mxu0 %v4318_v17  ;;  %v592_v8 = vld [vmem:[%s4950_s19 + $0xc08] sm:$0xff]  ;;  %v4206_v12 = vcombine.high %v336_v6, %v344_v7  ;;  %v577_v17 = vld [vmem:[%s4950_s19 + $0xb90] sm:$0xff]  ;;  %v4205_v20 = vcombine.low %v336_v6, %v344_v7 }
  0xa1   : > { %3417 = vmatpush1.bf16.msra.mxu1 %v4333_v15  ;;  %v600_v9 = vld [vmem:[%s4950_s19 + $0xc48] sm:$0xff]  ;;  %v329_v15 = vld [vmem:[%s4950_s19 + $0x3d0] sm:$0xff] }
  0xa2   : > { %3418 = vmatprep.subr.bf16.mxu1 %v4574_v18  ;;  %v4462_v13 = vcombine.high %v592_v8, %v600_v9  ;;  %v585_v18 = vld [vmem:[%s4950_s19 + $0xbd0] sm:$0xff]  ;;  %v4461_v21 = vcombine.low %v592_v8, %v600_v9  ;;  %v4192_v22 = vcombine.high %v321_v14, %v329_v15  ;;  %v4191_v28 = vcombine.low %v321_v14, %v329_v15 }
  0xa3   : > { %3378 = vmatpush2.bf16.msra.mxu0 %v4317_v24  ;;  %v4448_v23 = vcombine.high %v577_v17, %v585_v18  ;;  %v305_v24 = vld [vmem:[%s4950_s19 + $0x310] sm:$0xff]  ;;  %v4447_v29 = vcombine.low %v577_v17, %v585_v18 }
  0xa4   : > { %3379 = vmatprep.subr.bf16.mxu0 %v4302_v26  ;;  %v561_v26 = vld [vmem:[%s4950_s19 + $0xb10] sm:$0xff] }
  0xa5   : > { %3419 = vmatpush2.bf16.msra.mxu1 %v4573_v25  ;;  %v313_v25 = vld [vmem:[%s4950_s19 + $0x350] sm:$0xff] }
  0xa6   : > { %3420 = vmatprep.subr.bf16.mxu1 %v4558_v27  ;;  %v569_v27 = vld [vmem:[%s4950_s19 + $0xb50] sm:$0xff]  ;;  %v4176_v30 = vcombine.high %v305_v24, %v313_v25  ;;  %v4175_v36 = vcombine.low %v305_v24, %v313_v25 }
  0xa7   : > { %3380 = vmatpush2.bf16.msra.mxu0 %v4301_v32  ;;  %v4432_v31 = vcombine.high %v561_v26, %v569_v27  ;;  %v289_v32 = vld [vmem:[%s4950_s19 + $0x290] sm:$0xff]  ;;  %v4431_v37 = vcombine.low %v561_v26, %v569_v27 }
  0xa8   : > { %3381 = vmatprep.subr.bf16.mxu0 %v4286_v34  ;;  %v545_v34 = vld [vmem:[%s4950_s19 + $0xa90] sm:$0xff] }
  0xa9   : > { %3421 = vmatpush2.bf16.msra.mxu1 %v4557_v33  ;;  %v297_v33 = vld [vmem:[%s4950_s19 + $0x2d0] sm:$0xff] }
  0xaa   : > { %3422 = vmatprep.subr.bf16.mxu1 %v4542_v35  ;;  %v553_v35 = vld [vmem:[%s4950_s19 + $0xad0] sm:$0xff]  ;;  %v4160_v38 = vcombine.high %v289_v32, %v297_v33  ;;  %v4159_v44 = vcombine.low %v289_v32, %v297_v33 }
  0xab   : > { %3382 = vmatpush2.bf16.msra.mxu0 %v4285_v40  ;;  %v4416_v39 = vcombine.high %v545_v34, %v553_v35  ;;  %v273_v40 = vld [vmem:[%s4950_s19 + $0x210] sm:$0xff]  ;;  %v4415_v45 = vcombine.low %v545_v34, %v553_v35 }
  0xac   : > { %3383 = vmatprep.subr.bf16.mxu0 %v4270_v42  ;;  %v529_v42 = vld [vmem:[%s4950_s19 + $0xa10] sm:$0xff] }
  0xad   : > { %3423 = vmatpush2.bf16.msra.mxu1 %v4541_v41  ;;  %v281_v41 = vld [vmem:[%s4950_s19 + $0x250] sm:$0xff] }
  0xae   : > { %3424 = vmatprep.subr.bf16.mxu1 %v4526_v43  ;;  %v537_v43 = vld [vmem:[%s4950_s19 + $0xa50] sm:$0xff]  ;;  %v4144_v46 = vcombine.high %v273_v40, %v281_v41  ;;  %v4143_v52 = vcombine.low %v273_v40, %v281_v41 }
  0xaf   : > { %3384 = vmatpush2.bf16.msra.mxu0 %v4269_v48  ;;  %v4400_v47 = vcombine.high %v529_v42, %v537_v43  ;;  %v257_v48 = vld [vmem:[%s4950_s19 + $0x190] sm:$0xff]  ;;  %v4399_v53 = vcombine.low %v529_v42, %v537_v43 }
  0xb0   : > { %3385 = vmatprep.subr.bf16.mxu0 %v4254_v50  ;;  %v513_v50 = vld [vmem:[%s4950_s19 + $0x990] sm:$0xff] }
  0xb1   : > { %3425 = vmatpush2.bf16.msra.mxu1 %v4525_v49  ;;  %v265_v49 = vld [vmem:[%s4950_s19 + $0x1d0] sm:$0xff] }
  0xb2   : > { %3426 = vmatprep.subr.bf16.mxu1 %v4510_v51  ;;  %v521_v51 = vld [vmem:[%s4950_s19 + $0x9d0] sm:$0xff]  ;;  %v4128_v54 = vcombine.high %v257_v48, %v265_v49  ;;  %v4127_v62 = vcombine.low %v257_v48, %v265_v49 }
  0xb3   : > { %3386 = vmatpush2.bf16.msra.mxu0 %v4253_v56  ;;  %v4384_v55 = vcombine.high %v513_v50, %v521_v51  ;;  %v241_v56 = vld [vmem:[%s4950_s19 + $0x110] sm:$0xff]  ;;  %v4383_v63 = vcombine.low %v513_v50, %v521_v51 }
  0xb4   : > { %3387 = vmatprep.subr.bf16.mxu0 %v4238_v60  ;;  %v497_v60 = vld [vmem:[%s4950_s19 + $0x910] sm:$0xff] }
  0xb5   : > { %3427 = vmatpush2.bf16.msra.mxu1 %v4509_v57  ;;  %v249_v57 = vld [vmem:[%s4950_s19 + $0x150] sm:$0xff] }
  0xb6   : > { %3428 = vmatprep.subr.bf16.mxu1 %v4494_v61  ;;  %v505_v61 = vld [vmem:[%s4950_s19 + $0x950] sm:$0xff]  ;;  %v4112_v0 = vcombine.high %v241_v56, %v249_v57  ;;  %v4111_v6 = vcombine.low %v241_v56, %v249_v57 }
  0xb7   : > { %3388 = vmatpush2.bf16.msra.mxu0 %v4237_v2  ;;  %v4368_v1 = vcombine.high %v497_v60, %v505_v61  ;;  %v225_v2 = vld [vmem:[%s4950_s19 + $0x90] sm:$0xff]  ;;  %v4367_v7 = vcombine.low %v497_v60, %v505_v61 }
  0xb8   : > { %3389 = vmatprep.subr.bf16.mxu0 %v4222_v4  ;;  %v481_v4 = vld [vmem:[%s4950_s19 + $0x890] sm:$0xff] }
  0xb9   : > { %3429 = vmatpush2.bf16.msra.mxu1 %v4493_v3  ;;  %v233_v3 = vld [vmem:[%s4950_s19 + $0xd0] sm:$0xff] }
  0xba   : > { %3430 = vmatprep.subr.bf16.mxu1 %v4478_v5  ;;  %v489_v5 = vld [vmem:[%s4950_s19 + $0x8d0] sm:$0xff]  ;;  %v4096_v8 = vcombine.high %v225_v2, %v233_v3  ;;  %v4095_v14 = vcombine.low %v225_v2, %v233_v3 }
  0xbb   : > { %3390 = vmatpush2.bf16.msra.mxu0 %v4221_v10  ;;  %v4352_v9 = vcombine.high %v481_v4, %v489_v5  ;;  %v209_v10 = vld [vmem:[%s4950_s19 + $0x10] sm:$0xff]  ;;  %v4351_v15 = vcombine.low %v481_v4, %v489_v5 }
  0xbc   : > { %3391 = vmatprep.subr.bf16.mxu0 %v4206_v12  ;;  %v465_v12 = vld [vmem:[%s4950_s19 + $0x810] sm:$0xff] }
  0xbd   : > { %3431 = vmatpush2.bf16.msra.mxu1 %v4477_v11  ;;  %v217_v11 = vld [vmem:[%s4950_s19 + $0x50] sm:$0xff] }
  0xbe   : > { %3432 = vmatprep.subr.bf16.mxu1 %v4462_v13  ;;  %v473_v13 = vld [vmem:[%s4950_s19 + $0x850] sm:$0xff]  ;;  %v4080_v17 = vcombine.high %v209_v10, %v217_v11  ;;  %v4079_v24 = vcombine.low %v209_v10, %v217_v11 }
  0xbf   : > { %3392 = vmatpush2.bf16.msra.mxu0 %v4205_v20  ;;  %v4336_v18 = vcombine.high %v465_v12, %v473_v13  ;;  %v449_v20 = vld [vmem:[%s4950_s19 + $0x790] sm:$0xff]  ;;  %v4335_v25 = vcombine.low %v465_v12, %v473_v13 }
  0xc0   : > { %3443 = vmatprep.subr.bf16.mxu0 %v4192_v22  ;;  %v705_v22 = vld [vmem:[%s4950_s19 + $0xf90] sm:$0xff] }
  0xc1   : > { %3433 = vmatpush2.bf16.msra.mxu1 %v4461_v21  ;;  %v457_v21 = vld [vmem:[%s4950_s19 + $0x7d0] sm:$0xff] }
  0xc2   : > { %3484 = vmatprep.subr.bf16.mxu1 %v4448_v23  ;;  %3394 = vmatmul.mubr.bf16.vlgmr.msra.gmra.mxu0 %v5032_v16  ;;  %v713_v23 = vld [vmem:[%s4950_s19 + $0xfd0] sm:$0xff]  ;;  %v4320_v26 = vcombine.high %v449_v20, %v457_v21  ;;  %v4319_v32 = vcombine.low %v449_v20, %v457_v21 }
  0xc3   : > { %3444 = vmatpush1.bf16.msra.mxu0 %v4191_v28  ;;  %3475 = vmatprep.mubr.bf16.mxu0 %v4986_v58  ;;  %v4576_v27 = vcombine.high %v705_v22, %v713_v23  ;;  %v433_v28 = vld [vmem:[%s4950_s19 + $0x710] sm:$0xff]  ;;  %v4575_v33 = vcombine.low %v705_v22, %v713_v23 }
  0xc4   : > { %3435 = vmatmul.mubr.bf16.vlgmr.msra.gmra.mxu1 %v5036_v19  ;;  %3445 = vmatprep.subr.bf16.mxu0 %v4176_v30  ;;  %v689_v30 = vld [vmem:[%s4950_s19 + $0xf10] sm:$0xff] }
  0xc5   : > { %3485 = vmatpush1.bf16.msra.mxu1 %v4447_v29  ;;  %3516 = vmatprep.mubr.bf16.mxu1 %v4988_v59  ;;  %v441_v29 = vld [vmem:[%s4950_s19 + $0x750] sm:$0xff] }
  0xc6   : > { %3486 = vmatprep.subr.bf16.mxu1 %v4432_v31  ;;  %v697_v31 = vld [vmem:[%s4950_s19 + $0xf50] sm:$0xff]  ;;  %v4304_v34 = vcombine.high %v433_v28, %v441_v29  ;;  %v4303_v40 = vcombine.low %v433_v28, %v441_v29 }
  0xc7   : > { %3446 = vmatpush1.bf16.msra.mxu0 %v4175_v36  ;;  %v4560_v35 = vcombine.high %v689_v30, %v697_v31  ;;  %v417_v36 = vld [vmem:[%s4950_s19 + $0x690] sm:$0xff]  ;;  %v4559_v41 = vcombine.low %v689_v30, %v697_v31 }
  0xc8   : > { %3447 = vmatprep.subr.bf16.mxu0 %v4160_v38  ;;  %v673_v38 = vld [vmem:[%s4950_s19 + $0xe90] sm:$0xff] }
  0xc9   : > { %3487 = vmatpush1.bf16.msra.mxu1 %v4431_v37  ;;  %v425_v37 = vld [vmem:[%s4950_s19 + $0x6d0] sm:$0xff] }
  0xca   : > { %3488 = vmatprep.subr.bf16.mxu1 %v4416_v39  ;;  %v681_v39 = vld [vmem:[%s4950_s19 + $0xed0] sm:$0xff]  ;;  %v4288_v42 = vcombine.high %v417_v36, %v425_v37  ;;  %v4287_v48 = vcombine.low %v417_v36, %v425_v37 }
  0xcb   : > { %3448 = vmatpush1.bf16.msra.mxu0 %v4159_v44  ;;  %v4544_v43 = vcombine.high %v673_v38, %v681_v39  ;;  %v401_v44 = vld [vmem:[%s4950_s19 + $0x610] sm:$0xff]  ;;  %v4543_v49 = vcombine.low %v673_v38, %v681_v39 }
  0xcc   : > { %3449 = vmatprep.subr.bf16.mxu0 %v4144_v46  ;;  %v657_v46 = vld [vmem:[%s4950_s19 + $0xe10] sm:$0xff] }
  0xcd   : > { %3489 = vmatpush1.bf16.msra.mxu1 %v4415_v45  ;;  %v409_v45 = vld [vmem:[%s4950_s19 + $0x650] sm:$0xff] }
  0xce   : > { %3490 = vmatprep.subr.bf16.mxu1 %v4400_v47  ;;  %v665_v47 = vld [vmem:[%s4950_s19 + $0xe50] sm:$0xff]  ;;  %v4272_v50 = vcombine.high %v401_v44, %v409_v45  ;;  %v4271_v56 = vcombine.low %v401_v44, %v409_v45 }
  0xcf   : > { %3450 = vmatpush1.bf16.msra.mxu0 %v4143_v52  ;;  %v4528_v51 = vcombine.high %v657_v46, %v665_v47  ;;  %v385_v52 = vld [vmem:[%s4950_s19 + $0x590] sm:$0xff]  ;;  %v4527_v57 = vcombine.low %v657_v46, %v665_v47 }
  0xd0   : > { %3451 = vmatprep.subr.bf16.mxu0 %v4128_v54  ;;  %v641_v54 = vld [vmem:[%s4950_s19 + $0xd90] sm:$0xff] }
  0xd1   : > { %3491 = vmatpush1.bf16.msra.mxu1 %v4399_v53  ;;  %v393_v53 = vld [vmem:[%s4950_s19 + $0x5d0] sm:$0xff] }
  0xd2   : > { %3492 = vmatprep.subr.bf16.mxu1 %v4384_v55  ;;  %v649_v55 = vld [vmem:[%s4950_s19 + $0xdd0] sm:$0xff]  ;;  %v4256_v60 = vcombine.high %v385_v52, %v393_v53  ;;  %v4255_v2 = vcombine.low %v385_v52, %v393_v53 }
  0xd3   : > { %3452 = vmatpush1.bf16.msra.mxu0 %v4127_v62  ;;  %v4512_v61 = vcombine.high %v641_v54, %v649_v55  ;;  %v369_v62 = vld [vmem:[%s4950_s19 + $0x510] sm:$0xff]  ;;  %v4511_v3 = vcombine.low %v641_v54, %v649_v55 }
  0xd4   : > { %3453 = vmatprep.subr.bf16.mxu0 %v4112_v0  ;;  %v625_v0 = vld [vmem:[%s4950_s19 + $0xd10] sm:$0xff] }
  0xd5   : > { %3493 = vmatpush1.bf16.msra.mxu1 %v4383_v63  ;;  %v377_v63 = vld [vmem:[%s4950_s19 + $0x550] sm:$0xff] }
  0xd6   : > { %3494 = vmatprep.subr.bf16.mxu1 %v4368_v1  ;;  %v633_v1 = vld [vmem:[%s4950_s19 + $0xd50] sm:$0xff]  ;;  %v4240_v4 = vcombine.high %v369_v62, %v377_v63  ;;  %v4239_v10 = vcombine.low %v369_v62, %v377_v63 }
  0xd7   : > { %3454 = vmatpush1.bf16.msra.mxu0 %v4111_v6  ;;  %v4496_v5 = vcombine.high %v625_v0, %v633_v1  ;;  %v353_v6 = vld [vmem:[%s4950_s19 + $0x490] sm:$0xff]  ;;  %v4495_v11 = vcombine.low %v625_v0, %v633_v1 }
  0xd8   : > { %3455 = vmatprep.subr.bf16.mxu0 %v4096_v8  ;;  %v609_v8 = vld [vmem:[%s4950_s19 + $0xc90] sm:$0xff] }
  0xd9   : > { %3495 = vmatpush1.bf16.msra.mxu1 %v4367_v7  ;;  %v361_v7 = vld [vmem:[%s4950_s19 + $0x4d0] sm:$0xff] }
  0xda   : > { %3496 = vmatprep.subr.bf16.mxu1 %v4352_v9  ;;  %v617_v9 = vld [vmem:[%s4950_s19 + $0xcd0] sm:$0xff]  ;;  %v4224_v12 = vcombine.high %v353_v6, %v361_v7  ;;  %v4223_v20 = vcombine.low %v353_v6, %v361_v7 }
  0xdb   : > { %3456 = vmatpush1.bf16.msra.mxu0 %v4095_v14  ;;  %v4480_v13 = vcombine.high %v609_v8, %v617_v9  ;;  %v337_v14 = vld [vmem:[%s4950_s19 + $0x410] sm:$0xff]  ;;  %v4479_v21 = vcombine.low %v609_v8, %v617_v9 }
  0xdc   : > { %3457 = vmatprep.subr.bf16.mxu0 %v4080_v17  ;;  %v593_v17 = vld [vmem:[%s4950_s19 + $0xc10] sm:$0xff] }
  0xdd   : > { %3497 = vmatpush1.bf16.msra.mxu1 %v4351_v15  ;;  %v345_v15 = vld [vmem:[%s4950_s19 + $0x450] sm:$0xff] }
  0xde   : > { %3498 = vmatprep.subr.bf16.mxu1 %v4336_v18  ;;  %v601_v18 = vld [vmem:[%s4950_s19 + $0xc50] sm:$0xff]  ;;  %v4208_v22 = vcombine.high %v337_v14, %v345_v15  ;;  %v4207_v28 = vcombine.low %v337_v14, %v345_v15 }
  0xdf   : > { %3458 = vmatpush1.bf16.msra.mxu0 %v4079_v24  ;;  %v4464_v23 = vcombine.high %v593_v17, %v601_v18  ;;  %v322_v24 = vld [vmem:[%s4950_s19 + $0x398] sm:$0xff]  ;;  %v4463_v29 = vcombine.low %v593_v17, %v601_v18 }
  0xe0   : > { %3459 = vmatprep.subr.bf16.mxu0 %v4320_v26  ;;  %v578_v26 = vld [vmem:[%s4950_s19 + $0xb98] sm:$0xff] }
  0xe1   : > { %3499 = vmatpush1.bf16.msra.mxu1 %v4335_v25  ;;  %v330_v25 = vld [vmem:[%s4950_s19 + $0x3d8] sm:$0xff] }
  0xe2   : > { %3500 = vmatprep.subr.bf16.mxu1 %v4576_v27  ;;  %v586_v27 = vld [vmem:[%s4950_s19 + $0xbd8] sm:$0xff]  ;;  %v4194_v30 = vcombine.high %v322_v24, %v330_v25  ;;  %v4193_v36 = vcombine.low %v322_v24, %v330_v25 }
  0xe3   : > { %3460 = vmatpush2.bf16.msra.mxu0 %v4319_v32  ;;  %v4450_v31 = vcombine.high %v578_v26, %v586_v27  ;;  %v306_v32 = vld [vmem:[%s4950_s19 + $0x318] sm:$0xff]  ;;  %v4449_v37 = vcombine.low %v578_v26, %v586_v27 }
  0xe4   : > { %3461 = vmatprep.subr.bf16.mxu0 %v4304_v34  ;;  %v562_v34 = vld [vmem:[%s4950_s19 + $0xb18] sm:$0xff] }
  0xe5   : > { %3501 = vmatpush2.bf16.msra.mxu1 %v4575_v33  ;;  %v314_v33 = vld [vmem:[%s4950_s19 + $0x358] sm:$0xff] }
  0xe6   : > { %3502 = vmatprep.subr.bf16.mxu1 %v4560_v35  ;;  %v570_v35 = vld [vmem:[%s4950_s19 + $0xb58] sm:$0xff]  ;;  %v4178_v38 = vcombine.high %v306_v32, %v314_v33  ;;  %v4177_v44 = vcombine.low %v306_v32, %v314_v33 }
  0xe7   : > { %3462 = vmatpush2.bf16.msra.mxu0 %v4303_v40  ;;  %v4434_v39 = vcombine.high %v562_v34, %v570_v35  ;;  %v290_v40 = vld [vmem:[%s4950_s19 + $0x298] sm:$0xff]  ;;  %v4433_v45 = vcombine.low %v562_v34, %v570_v35 }
  0xe8   : > { %3463 = vmatprep.subr.bf16.mxu0 %v4288_v42  ;;  %v546_v42 = vld [vmem:[%s4950_s19 + $0xa98] sm:$0xff] }
  0xe9   : > { %3503 = vmatpush2.bf16.msra.mxu1 %v4559_v41  ;;  %v298_v41 = vld [vmem:[%s4950_s19 + $0x2d8] sm:$0xff] }
  0xea   : > { %3504 = vmatprep.subr.bf16.mxu1 %v4544_v43  ;;  %v554_v43 = vld [vmem:[%s4950_s19 + $0xad8] sm:$0xff]  ;;  %v4162_v46 = vcombine.high %v290_v40, %v298_v41  ;;  %v4161_v52 = vcombine.low %v290_v40, %v298_v41 }
  0xeb   : > { %3464 = vmatpush2.bf16.msra.mxu0 %v4287_v48  ;;  %v4418_v47 = vcombine.high %v546_v42, %v554_v43  ;;  %v274_v48 = vld [vmem:[%s4950_s19 + $0x218] sm:$0xff]  ;;  %v4417_v53 = vcombine.low %v546_v42, %v554_v43 }
  0xec   : > { %3465 = vmatprep.subr.bf16.mxu0 %v4272_v50  ;;  %v530_v50 = vld [vmem:[%s4950_s19 + $0xa18] sm:$0xff] }
  0xed   : > { %3505 = vmatpush2.bf16.msra.mxu1 %v4543_v49  ;;  %v282_v49 = vld [vmem:[%s4950_s19 + $0x258] sm:$0xff] }
  0xee   : > { %3506 = vmatprep.subr.bf16.mxu1 %v4528_v51  ;;  %v538_v51 = vld [vmem:[%s4950_s19 + $0xa58] sm:$0xff]  ;;  %v4146_v54 = vcombine.high %v274_v48, %v282_v49  ;;  %v4145_v62 = vcombine.low %v274_v48, %v282_v49 }
  0xef   : > { %3466 = vmatpush2.bf16.msra.mxu0 %v4271_v56  ;;  %v4402_v55 = vcombine.high %v530_v50, %v538_v51  ;;  %v258_v56 = vld [vmem:[%s4950_s19 + $0x198] sm:$0xff]  ;;  %v4401_v63 = vcombine.low %v530_v50, %v538_v51 }
  0xf0   : > { %3467 = vmatprep.subr.bf16.mxu0 %v4256_v60  ;;  %v514_v60 = vld [vmem:[%s4950_s19 + $0x998] sm:$0xff] }
  0xf1   : > { %3507 = vmatpush2.bf16.msra.mxu1 %v4527_v57  ;;  %v266_v57 = vld [vmem:[%s4950_s19 + $0x1d8] sm:$0xff] }
  0xf2   : > { %3508 = vmatprep.subr.bf16.mxu1 %v4512_v61  ;;  %v522_v61 = vld [vmem:[%s4950_s19 + $0x9d8] sm:$0xff]  ;;  %v4130_v0 = vcombine.high %v258_v56, %v266_v57  ;;  %v4129_v6 = vcombine.low %v258_v56, %v266_v57 }
  0xf3   : > { %3468 = vmatpush2.bf16.msra.mxu0 %v4255_v2  ;;  %v4386_v1 = vcombine.high %v514_v60, %v522_v61  ;;  %v242_v2 = vld [vmem:[%s4950_s19 + $0x118] sm:$0xff]  ;;  %v4385_v7 = vcombine.low %v514_v60, %v522_v61 }
  0xf4   : > { %3469 = vmatprep.subr.bf16.mxu0 %v4240_v4  ;;  %v498_v4 = vld [vmem:[%s4950_s19 + $0x918] sm:$0xff] }
  0xf5   : > { %3509 = vmatpush2.bf16.msra.mxu1 %v4511_v3  ;;  %v250_v3 = vld [vmem:[%s4950_s19 + $0x158] sm:$0xff] }
  0xf6   : > { %3510 = vmatprep.subr.bf16.mxu1 %v4496_v5  ;;  %v506_v5 = vld [vmem:[%s4950_s19 + $0x958] sm:$0xff]  ;;  %v4114_v8 = vcombine.high %v242_v2, %v250_v3  ;;  %v4113_v14 = vcombine.low %v242_v2, %v250_v3 }
  0xf7   : > { %3470 = vmatpush2.bf16.msra.mxu0 %v4239_v10  ;;  %v4370_v9 = vcombine.high %v498_v4, %v506_v5  ;;  %v226_v10 = vld [vmem:[%s4950_s19 + $0x98] sm:$0xff]  ;;  %v4369_v15 = vcombine.low %v498_v4, %v506_v5 }
  0xf8   : > { %3471 = vmatprep.subr.bf16.mxu0 %v4224_v12  ;;  %v482_v12 = vld [vmem:[%s4950_s19 + $0x898] sm:$0xff] }
  0xf9   : > { %3511 = vmatpush2.bf16.msra.mxu1 %v4495_v11  ;;  %v234_v11 = vld [vmem:[%s4950_s19 + $0xd8] sm:$0xff] }
  0xfa   : > { %3512 = vmatprep.subr.bf16.mxu1 %v4480_v13  ;;  %v490_v13 = vld [vmem:[%s4950_s19 + $0x8d8] sm:$0xff]  ;;  %v4098_v17 = vcombine.high %v226_v10, %v234_v11  ;;  %v4097_v24 = vcombine.low %v226_v10, %v234_v11 }
  0xfb   : > { %3472 = vmatpush2.bf16.msra.mxu0 %v4223_v20  ;;  %v4354_v18 = vcombine.high %v482_v12, %v490_v13  ;;  %v210_v20 = vld [vmem:[%s4950_s19 + $0x18] sm:$0xff]  ;;  %v4353_v25 = vcombine.low %v482_v12, %v490_v13 }
  0xfc   : > { %3473 = vmatprep.subr.bf16.mxu0 %v4208_v22  ;;  %v466_v22 = vld [vmem:[%s4950_s19 + $0x818] sm:$0xff] }
  0xfd   : > { %3513 = vmatpush2.bf16.msra.mxu1 %v4479_v21  ;;  %v218_v21 = vld [vmem:[%s4950_s19 + $0x58] sm:$0xff] }
  0xfe   : > { %3514 = vmatprep.subr.bf16.mxu1 %v4464_v23  ;;  %v474_v23 = vld [vmem:[%s4950_s19 + $0x858] sm:$0xff]  ;;  %v4082_v26 = vcombine.high %v210_v20, %v218_v21  ;;  %v4081_v32 = vcombine.low %v210_v20, %v218_v21 }
  0xff   : > { %3474 = vmatpush2.bf16.msra.mxu0 %v4207_v28  ;;  %v4338_v27 = vcombine.high %v466_v22, %v474_v23  ;;  %v450_v28 = vld [vmem:[%s4950_s19 + $0x798] sm:$0xff]  ;;  %v4337_v33 = vcombine.low %v466_v22, %v474_v23 }
 0x100   : > { %3525 = vmatprep.subr.bf16.mxu0 %v4194_v30  ;;  %v706_v30 = vld [vmem:[%s4950_s19 + $0xf98] sm:$0xff] }
 0x101   : > { %3515 = vmatpush2.bf16.msra.mxu1 %v4463_v29  ;;  %v458_v29 = vld [vmem:[%s4950_s19 + $0x7d8] sm:$0xff] }
 0x102   : > { %3566 = vmatprep.subr.bf16.mxu1 %v4450_v31  ;;  %3476 = vmatmul.mubr.bf16.vlgmr.msra.gmra.mxu0 %v5032_v16  ;;  %v714_v31 = vld [vmem:[%s4950_s19 + $0xfd8] sm:$0xff]  ;;  %v4322_v34 = vcombine.high %v450_v28, %v458_v29  ;;  %v4321_v40 = vcombine.low %v450_v28, %v458_v29 }
 0x103   : > { %3526 = vmatpush1.bf16.msra.mxu0 %v4193_v36  ;;  %3557 = vmatprep.mubr.bf16.mxu0 %v4986_v58  ;;  %v4578_v35 = vcombine.high %v706_v30, %v714_v31  ;;  %v434_v36 = vld [vmem:[%s4950_s19 + $0x718] sm:$0xff]  ;;  %v4577_v41 = vcombine.low %v706_v30, %v714_v31 }
 0x104   : > { %3517 = vmatmul.mubr.bf16.vlgmr.msra.gmra.mxu1 %v5036_v19  ;;  %3527 = vmatprep.subr.bf16.mxu0 %v4178_v38  ;;  %v690_v38 = vld [vmem:[%s4950_s19 + $0xf18] sm:$0xff] }
 0x105   : > { %3567 = vmatpush1.bf16.msra.mxu1 %v4449_v37  ;;  %3598 = vmatprep.mubr.bf16.mxu1 %v4988_v59  ;;  %v442_v37 = vld [vmem:[%s4950_s19 + $0x758] sm:$0xff] }
 0x106   : > { %3568 = vmatprep.subr.bf16.mxu1 %v4434_v39  ;;  %v698_v39 = vld [vmem:[%s4950_s19 + $0xf58] sm:$0xff]  ;;  %v4306_v42 = vcombine.high %v434_v36, %v442_v37  ;;  %v4305_v48 = vcombine.low %v434_v36, %v442_v37 }
 0x107   : > { %3528 = vmatpush1.bf16.msra.mxu0 %v4177_v44  ;;  %v4562_v43 = vcombine.high %v690_v38, %v698_v39  ;;  %v418_v44 = vld [vmem:[%s4950_s19 + $0x698] sm:$0xff]  ;;  %v4561_v49 = vcombine.low %v690_v38, %v698_v39 }
 0x108   : > { %3529 = vmatprep.subr.bf16.mxu0 %v4162_v46  ;;  %v674_v46 = vld [vmem:[%s4950_s19 + $0xe98] sm:$0xff] }
 0x109   : > { %3569 = vmatpush1.bf16.msra.mxu1 %v4433_v45  ;;  %v426_v45 = vld [vmem:[%s4950_s19 + $0x6d8] sm:$0xff] }
 0x10a   : > { %3570 = vmatprep.subr.bf16.mxu1 %v4418_v47  ;;  %v682_v47 = vld [vmem:[%s4950_s19 + $0xed8] sm:$0xff]  ;;  %v4290_v50 = vcombine.high %v418_v44, %v426_v45  ;;  %v4289_v56 = vcombine.low %v418_v44, %v426_v45 }
 0x10b   : > { %3530 = vmatpush1.bf16.msra.mxu0 %v4161_v52  ;;  %v4546_v51 = vcombine.high %v674_v46, %v682_v47  ;;  %v402_v52 = vld [vmem:[%s4950_s19 + $0x618] sm:$0xff]  ;;  %v4545_v57 = vcombine.low %v674_v46, %v682_v47 }
 0x10c   : > { %3531 = vmatprep.subr.bf16.mxu0 %v4146_v54  ;;  %v658_v54 = vld [vmem:[%s4950_s19 + $0xe18] sm:$0xff] }
 0x10d   : > { %3571 = vmatpush1.bf16.msra.mxu1 %v4417_v53  ;;  %v410_v53 = vld [vmem:[%s4950_s19 + $0x658] sm:$0xff] }
 0x10e   : > { %3572 = vmatprep.subr.bf16.mxu1 %v4402_v55  ;;  %v666_v55 = vld [vmem:[%s4950_s19 + $0xe58] sm:$0xff]  ;;  %v4274_v60 = vcombine.high %v402_v52, %v410_v53  ;;  %v4273_v2 = vcombine.low %v402_v52, %v410_v53  ;;  %v555_v52 = vld [vmem:[%s4950_s19 + $0xae0] sm:$0xff] }
 0x10f   : > { %3532 = vmatpush1.bf16.msra.mxu0 %v4145_v62  ;;  %v4530_v61 = vcombine.high %v658_v54, %v666_v55  ;;  %v386_v62 = vld [vmem:[%s4950_s19 + $0x598] sm:$0xff]  ;;  %v4529_v3 = vcombine.low %v658_v54, %v666_v55 }
 0x110   : > { %3533 = vmatprep.subr.bf16.mxu0 %v4130_v0  ;;  %v642_v0 = vld [vmem:[%s4950_s19 + $0xd98] sm:$0xff] }
 0x111   : > { %3573 = vmatpush1.bf16.msra.mxu1 %v4401_v63  ;;  %v394_v63 = vld [vmem:[%s4950_s19 + $0x5d8] sm:$0xff] }
 0x112   : > { %3574 = vmatprep.subr.bf16.mxu1 %v4386_v1  ;;  %v650_v1 = vld [vmem:[%s4950_s19 + $0xdd8] sm:$0xff]  ;;  %v4258_v4 = vcombine.high %v386_v62, %v394_v63  ;;  %v4257_v10 = vcombine.low %v386_v62, %v394_v63  ;;  %v275_v63 = vld [vmem:[%s4950_s19 + $0x220] sm:$0xff] }
 0x113   : > { %3534 = vmatpush1.bf16.msra.mxu0 %v4129_v6  ;;  %v4514_v5 = vcombine.high %v642_v0, %v650_v1  ;;  %v370_v6 = vld [vmem:[%s4950_s19 + $0x518] sm:$0xff]  ;;  %v4513_v11 = vcombine.low %v642_v0, %v650_v1  ;;  %v283_v0 = vld [vmem:[%s4950_s19 + $0x260] sm:$0xff] }
 0x114   : > { %3535 = vmatprep.subr.bf16.mxu0 %v4114_v8  ;;  %v626_v8 = vld [vmem:[%s4950_s19 + $0xd18] sm:$0xff] }
 0x115   : > { %3575 = vmatpush1.bf16.msra.mxu1 %v4385_v7  ;;  %v378_v7 = vld [vmem:[%s4950_s19 + $0x558] sm:$0xff] }
 0x116   : > { %3576 = vmatprep.subr.bf16.mxu1 %v4370_v9  ;;  %v634_v9 = vld [vmem:[%s4950_s19 + $0xd58] sm:$0xff]  ;;  %v4242_v12 = vcombine.high %v370_v6, %v378_v7  ;;  %v4241_v20 = vcombine.low %v370_v6, %v378_v7 }
 0x117   : > { %3536 = vmatpush1.bf16.msra.mxu0 %v4113_v14  ;;  %v4498_v13 = vcombine.high %v626_v8, %v634_v9  ;;  %v354_v14 = vld [vmem:[%s4950_s19 + $0x498] sm:$0xff]  ;;  %v4497_v21 = vcombine.low %v626_v8, %v634_v9  ;;  %v4148_v9 = vcombine.high %v275_v63, %v283_v0 }
 0x118   : > { %3537 = vmatprep.subr.bf16.mxu0 %v4098_v17  ;;  %v610_v17 = vld [vmem:[%s4950_s19 + $0xc98] sm:$0xff] }
 0x119   : > { %3577 = vmatpush1.bf16.msra.mxu1 %v4369_v15  ;;  %v362_v15 = vld [vmem:[%s4950_s19 + $0x4d8] sm:$0xff] }
 0x11a   : > { %3578 = vmatprep.subr.bf16.mxu1 %v4354_v18  ;;  %v618_v18 = vld [vmem:[%s4950_s19 + $0xcd8] sm:$0xff]  ;;  %v4226_v22 = vcombine.high %v354_v14, %v362_v15  ;;  %v4225_v28 = vcombine.low %v354_v14, %v362_v15  ;;  %v515_v14 = vld [vmem:[%s4950_s19 + $0x9a0] sm:$0xff] }
 0x11b   : > { %3538 = vmatpush1.bf16.msra.mxu0 %v4097_v24  ;;  %v4482_v23 = vcombine.high %v610_v17, %v618_v18  ;;  %v338_v24 = vld [vmem:[%s4950_s19 + $0x418] sm:$0xff]  ;;  %v4481_v29 = vcombine.low %v610_v17, %v618_v18  ;;  %v523_v15 = vld [vmem:[%s4950_s19 + $0x9e0] sm:$0xff]  ;;  %v4147_v17 = vcombine.low %v275_v63, %v283_v0 }
 0x11c   : > { %3539 = vmatprep.subr.bf16.mxu0 %v4082_v26  ;;  %v594_v26 = vld [vmem:[%s4950_s19 + $0xc18] sm:$0xff]  ;;  %v419_v0 = vld [vmem:[%s4950_s19 + $0x6a0] sm:$0xff] }
 0x11d   : > { %3579 = vmatpush1.bf16.msra.mxu1 %v4353_v25  ;;  %v346_v25 = vld [vmem:[%s4950_s19 + $0x458] sm:$0xff] }
 0x11e   : > { %3580 = vmatprep.subr.bf16.mxu1 %v4338_v27  ;;  %v602_v27 = vld [vmem:[%s4950_s19 + $0xc58] sm:$0xff]  ;;  %v4210_v30 = vcombine.high %v338_v24, %v346_v25  ;;  %v4209_v36 = vcombine.low %v338_v24, %v346_v25  ;;  %v499_v24 = vld [vmem:[%s4950_s19 + $0x920] sm:$0xff] }
 0x11f   : > { %3540 = vmatpush1.bf16.msra.mxu0 %v4081_v32  ;;  %v4466_v31 = vcombine.high %v594_v26, %v602_v27  ;;  %v323_v32 = vld [vmem:[%s4950_s19 + $0x3a0] sm:$0xff]  ;;  %v4465_v37 = vcombine.low %v594_v26, %v602_v27  ;;  %v4387_v27 = vcombine.low %v515_v14, %v523_v15 }
 0x120   : > { %3541 = vmatprep.subr.bf16.mxu0 %v4322_v34  ;;  %v579_v34 = vld [vmem:[%s4950_s19 + $0xba0] sm:$0xff] }
 0x121   : > { %3581 = vmatpush1.bf16.msra.mxu1 %v4337_v33  ;;  %v331_v33 = vld [vmem:[%s4950_s19 + $0x3e0] sm:$0xff] }
 0x122   : > { %3582 = vmatprep.subr.bf16.mxu1 %v4578_v35  ;;  %v587_v35 = vld [vmem:[%s4950_s19 + $0xbe0] sm:$0xff]  ;;  %v4196_v38 = vcombine.high %v323_v32, %v331_v33  ;;  %v4195_v44 = vcombine.low %v323_v32, %v331_v33 }
 0x123   : > { %3542 = vmatpush2.bf16.msra.mxu0 %v4321_v40  ;;  %v4452_v39 = vcombine.high %v579_v34, %v587_v35  ;;  %v307_v40 = vld [vmem:[%s4950_s19 + $0x320] sm:$0xff]  ;;  %v4451_v45 = vcombine.low %v579_v34, %v587_v35 }
 0x124   : > { %3543 = vmatprep.subr.bf16.mxu0 %v4306_v42  ;;  %v563_v42 = vld [vmem:[%s4950_s19 + $0xb20] sm:$0xff] }
 0x125   : > { %3583 = vmatpush2.bf16.msra.mxu1 %v4577_v41  ;;  %v315_v41 = vld [vmem:[%s4950_s19 + $0x360] sm:$0xff] }
 0x126   : > { %3584 = vmatprep.subr.bf16.mxu1 %v4562_v43  ;;  %v571_v43 = vld [vmem:[%s4950_s19 + $0xb60] sm:$0xff]  ;;  %v4180_v46 = vcombine.high %v307_v40, %v315_v41  ;;  %v4179_v54 = vcombine.low %v307_v40, %v315_v41 }
 0x127   : > { %3544 = vmatpush2.bf16.msra.mxu0 %v4305_v48  ;;  %v4436_v47 = vcombine.high %v563_v42, %v571_v43  ;;  %v291_v48 = vld [vmem:[%s4950_s19 + $0x2a0] sm:$0xff] }
 0x128   : > { %3545 = vmatprep.subr.bf16.mxu0 %v4290_v50  ;;  %v507_v25 = vld [vmem:[%s4950_s19 + $0x960] sm:$0xff] }
 0x129   : > { %3585 = vmatpush2.bf16.msra.mxu1 %v4561_v49  ;;  %v299_v49 = vld [vmem:[%s4950_s19 + $0x2e0] sm:$0xff]  ;;  %v4371_v35 = vcombine.low %v499_v24, %v507_v25 }
 0x12a   : > { %3586 = vmatprep.subr.bf16.mxu1 %v4546_v51  ;;  %v547_v51 = vld [vmem:[%s4950_s19 + $0xaa0] sm:$0xff]  ;;  %v4163_v6 = vcombine.low %v291_v48, %v299_v49 }
 0x12b   : > { %3546 = vmatpush2.bf16.msra.mxu0 %v4289_v56  ;;  %v4420_v62 = vcombine.high %v547_v51, %v555_v52  ;;  %v4419_v8 = vcombine.low %v547_v51, %v555_v52  ;;  %v483_v32 = vld [vmem:[%s4950_s19 + $0x8a0] sm:$0xff] }
 0x12c   : > { %3547 = vmatprep.subr.bf16.mxu0 %v4274_v60  ;;  %v4164_v60 = vcombine.high %v291_v48, %v299_v49  ;;  %v491_v33 = vld [vmem:[%s4950_s19 + $0x8e0] sm:$0xff] }
 0x12d   : > { %3587 = vmatpush2.bf16.msra.mxu1 %v4545_v57  ;;  %v4435_v57 = vcombine.low %v563_v42, %v571_v43  ;;  %v467_v40 = vld [vmem:[%s4950_s19 + $0x820] sm:$0xff]  ;;  %v4355_v43 = vcombine.low %v483_v32, %v491_v33 }
 0x12e   : > { %3588 = vmatprep.subr.bf16.mxu1 %v4530_v61  ;;  %v475_v41 = vld [vmem:[%s4950_s19 + $0x860] sm:$0xff] }
 0x12f   : > { %3548 = vmatpush2.bf16.msra.mxu0 %v4273_v2  ;;  %v707_v48 = vld [vmem:[%s4950_s19 + $0xfa0] sm:$0xff]  ;;  %v4339_v51 = vcombine.low %v467_v40, %v475_v41 }
 0x130   : > { %3549 = vmatprep.subr.bf16.mxu0 %v4258_v4  ;;  %v539_v4 = vld [vmem:[%s4950_s19 + $0xa60] sm:$0xff] }
 0x131   : > { %3589 = vmatpush2.bf16.msra.mxu1 %v4529_v3  ;;  %v531_v3 = vld [vmem:[%s4950_s19 + $0xa20] sm:$0xff] }
 0x132   : > { %3590 = vmatprep.subr.bf16.mxu1 %v4514_v5  ;;  %v4403_v18 = vcombine.low %v531_v3, %v539_v4  ;;  %v715_v49 = vld [vmem:[%s4950_s19 + $0xfe0] sm:$0xff] }
 0x133   : > { %3550 = vmatpush2.bf16.msra.mxu0 %v4257_v10 }
 0x134   : > { %3551 = vmatprep.subr.bf16.mxu0 %v4242_v12  ;;  %v259_v12 = vld [vmem:[%s4950_s19 + $0x1a0] sm:$0xff] }
 0x135   : > { %3591 = vmatpush2.bf16.msra.mxu1 %v4513_v11  ;;  %v4404_v11 = vcombine.high %v531_v3, %v539_v4  ;;  %v683_v3 = vld [vmem:[%s4950_s19 + $0xee0] sm:$0xff] }
 0x136   : > { %3592 = vmatprep.subr.bf16.mxu1 %v4498_v13  ;;  %v267_v13 = vld [vmem:[%s4950_s19 + $0x1e0] sm:$0xff] }
 0x137   : > { %3552 = vmatpush2.bf16.msra.mxu0 %v4241_v20  ;;  %v4132_v20 = vcombine.high %v259_v12, %v267_v13  ;;  %v4131_v26 = vcombine.low %v259_v12, %v267_v13 }
 0x138   : > { %3553 = vmatprep.subr.bf16.mxu0 %v4226_v22  ;;  %v243_v22 = vld [vmem:[%s4950_s19 + $0x120] sm:$0xff] }
 0x139   : > { %3593 = vmatpush2.bf16.msra.mxu1 %v4497_v21  ;;  %v4388_v21 = vcombine.high %v515_v14, %v523_v15 }
 0x13a   : > { %3594 = vmatprep.subr.bf16.mxu1 %v4482_v23  ;;  %v251_v23 = vld [vmem:[%s4950_s19 + $0x160] sm:$0xff] }
 0x13b   : > { %3554 = vmatpush2.bf16.msra.mxu0 %v4225_v28  ;;  %v4116_v28 = vcombine.high %v243_v22, %v251_v23  ;;  %v4115_v34 = vcombine.low %v243_v22, %v251_v23 }
 0x13c   : > { %3555 = vmatprep.subr.bf16.mxu0 %v4210_v30  ;;  %v227_v30 = vld [vmem:[%s4950_s19 + $0xa0] sm:$0xff] }
 0x13d   : > { %3595 = vmatpush2.bf16.msra.mxu1 %v4481_v29  ;;  %v4372_v29 = vcombine.high %v499_v24, %v507_v25 }
 0x13e   : > { %3596 = vmatprep.subr.bf16.mxu1 %v4466_v31  ;;  %v235_v31 = vld [vmem:[%s4950_s19 + $0xe0] sm:$0xff] }
 0x13f   : > { %3556 = vmatpush2.bf16.msra.mxu0 %v4209_v36  ;;  %v4100_v36 = vcombine.high %v227_v30, %v235_v31  ;;  %v4099_v42 = vcombine.low %v227_v30, %v235_v31 }
 0x140   : > { %3607 = vmatprep.subr.bf16.mxu0 %v4196_v38  ;;  %v211_v38 = vld [vmem:[%s4950_s19 + $0x20] sm:$0xff] }
 0x141   : > { %3597 = vmatpush2.bf16.msra.mxu1 %v4465_v37  ;;  %v4356_v37 = vcombine.high %v483_v32, %v491_v33 }
 0x142   : > { %3648 = vmatprep.subr.bf16.mxu1 %v4452_v39  ;;  %v3313_v50 = vpop.f32.mrf.mxu0  ;;  %3558 = vmatmul.mubr.bf16.vlgmr.msra.gmra.mxu0 %v5032_v16  ;;  %v219_v39 = vld [vmem:[%s4950_s19 + $0x60] sm:$0xff] }
 0x143   : > { %3608 = vmatpush1.bf16.msra.mxu0 %v4195_v44  ;;  %3639 = vmatprep.mubr.bf16.mxu0 %v4986_v58  ;;  %v4084_v44 = vcombine.high %v211_v38, %v219_v39 }
 0x144   : > { %v3354_v53 = vpop.f32.mrf.mxu1  ;;  %3599 = vmatmul.mubr.bf16.vlgmr.msra.gmra.mxu1 %v5036_v19  ;;  %v3315_v56 = vpop.f32.mrf.mxu0  ;;  %3609 = vmatprep.subr.bf16.mxu0 %v4180_v46  ;;  %v451_v46 = vld [vmem:[%s4950_s19 + $0x7a0] sm:$0xff] }
 0x145   : > { %v3355_v55 = vadd.f32 %v3354_v53, %v3313_v50  ;;  %3649 = vmatpush1.bf16.msra.mxu1 %v4451_v45  ;;  %3680 = vmatprep.mubr.bf16.mxu1 %v4988_v59  ;;  %v4340_v45 = vcombine.high %v467_v40, %v475_v41  ;;  %v4083_v50 = vcombine.low %v211_v38, %v219_v39 }
 0x146   : > { %v3356_v61 = vpop.f32.mrf.mxu1  ;;  %3650 = vmatprep.subr.bf16.mxu1 %v4436_v47  ;;  %v3317_v2 = vpop.f32.mrf.mxu0  ;;  %v459_v47 = vld [vmem:[%s4950_s19 + $0x7e0] sm:$0xff]  ;;  %v4580_v53 = vcombine.high %v707_v48, %v715_v49 }
 0x147   : > { %3935 = vst [vmem:[%s5252_s20] sm:$0xff] %v3355_v55  ;;  %v3357_v1 = vadd.f32 %v3356_v61, %v3315_v56  ;;  %3610 = vmatpush1.bf16.msra.mxu0 %v4179_v54  ;;  %v4324_v52 = vcombine.high %v451_v46, %v459_v47  ;;  %v435_v54 = vld [vmem:[%s4950_s19 + $0x720] sm:$0xff]  ;;  %v4579_v61 = vcombine.low %v707_v48, %v715_v49 }
 0x148   : > { %v3358_v5 = vpop.f32.mrf.mxu1  ;;  %v3318_v7 = vpop.f32.mrf.mxu0  ;;  %3611 = vmatprep.subr.bf16.mxu0 %v4164_v60  ;;  %v443_v55 = vld [vmem:[%s4950_s19 + $0x760] sm:$0xff]  ;;  %v4323_v60 = vcombine.low %v451_v46, %v459_v47 }
 0x149   : > { %3936 = vst [vmem:[%s5252_s20 + $0x8] sm:$0xff] %v3357_v1  ;;  %3651 = vmatpush1.bf16.msra.mxu1 %v4435_v57  ;;  %v691_v56 = vld [vmem:[%s4950_s19 + $0xf20] sm:$0xff]  ;;  %v4307_v4 = vcombine.low %v435_v54, %v443_v55 }
 0x14a   : > { %v3359_v10 = vpop.f32.mrf.mxu1  ;;  %3652 = vmatprep.subr.bf16.mxu1 %v4420_v62  ;;  %v699_v57 = vld [vmem:[%s4950_s19 + $0xf60] sm:$0xff]  ;;  %v4308_v62 = vcombine.high %v435_v54, %v443_v55 }
 0x14b   : > { %3612 = vmatpush1.bf16.msra.mxu0 %v4163_v6  ;;  %v4564_v63 = vcombine.high %v691_v56, %v699_v57  ;;  %v427_v1 = vld [vmem:[%s4950_s19 + $0x6e0] sm:$0xff]  ;;  %v4563_v5 = vcombine.low %v691_v56, %v699_v57 }
 0x14c   : > { %3613 = vmatprep.subr.bf16.mxu0 %v4148_v9  ;;  %v675_v2 = vld [vmem:[%s4950_s19 + $0xea0] sm:$0xff]  ;;  %v4292_v6 = vcombine.high %v419_v0, %v427_v1  ;;  %v4291_v12 = vcombine.low %v419_v0, %v427_v1 }
 0x14d   : > { %3653 = vmatpush1.bf16.msra.mxu1 %v4419_v8  ;;  %v4548_v7 = vcombine.high %v675_v2, %v683_v3  ;;  %v403_v8 = vld [vmem:[%s4950_s19 + $0x620] sm:$0xff]  ;;  %v4547_v13 = vcombine.low %v675_v2, %v683_v3 }
 0x14e   : > { %3654 = vmatprep.subr.bf16.mxu1 %v4404_v11  ;;  %v411_v9 = vld [vmem:[%s4950_s19 + $0x660] sm:$0xff] }
 0x14f   : > { %3614 = vmatpush1.bf16.msra.mxu0 %v4147_v17  ;;  %v659_v10 = vld [vmem:[%s4950_s19 + $0xe20] sm:$0xff]  ;;  %v4276_v14 = vcombine.high %v403_v8, %v411_v9  ;;  %v4275_v22 = vcombine.low %v403_v8, %v411_v9  ;;  %v556_v8 = vld [vmem:[%s4950_s19 + $0xae8] sm:$0xff] }
 0x150   : > { %3615 = vmatprep.subr.bf16.mxu0 %v4132_v20  ;;  %v667_v11 = vld [vmem:[%s4950_s19 + $0xe60] sm:$0xff] }
 0x151   : > { %3655 = vmatpush1.bf16.msra.mxu1 %v4403_v18  ;;  %v4532_v15 = vcombine.high %v659_v10, %v667_v11  ;;  %v387_v17 = vld [vmem:[%s4950_s19 + $0x5a0] sm:$0xff]  ;;  %v4531_v23 = vcombine.low %v659_v10, %v667_v11 }
 0x152   : > { %3656 = vmatprep.subr.bf16.mxu1 %v4388_v21  ;;  %v395_v18 = vld [vmem:[%s4950_s19 + $0x5e0] sm:$0xff] }
 0x153   : > { %3616 = vmatpush1.bf16.msra.mxu0 %v4131_v26  ;;  %v643_v20 = vld [vmem:[%s4950_s19 + $0xda0] sm:$0xff]  ;;  %v4260_v24 = vcombine.high %v387_v17, %v395_v18  ;;  %v4259_v30 = vcombine.low %v387_v17, %v395_v18  ;;  %v276_v18 = vld [vmem:[%s4950_s19 + $0x228] sm:$0xff] }
 0x154   : > { %3617 = vmatprep.subr.bf16.mxu0 %v4116_v28  ;;  %v651_v21 = vld [vmem:[%s4950_s19 + $0xde0] sm:$0xff] }
 0x155   : > { %3657 = vmatpush1.bf16.msra.mxu1 %v4387_v27  ;;  %v4516_v25 = vcombine.high %v643_v20, %v651_v21  ;;  %v371_v26 = vld [vmem:[%s4950_s19 + $0x520] sm:$0xff]  ;;  %v4515_v31 = vcombine.low %v643_v20, %v651_v21  ;;  %v284_v20 = vld [vmem:[%s4950_s19 + $0x268] sm:$0xff] }
 0x156   : > { %3658 = vmatprep.subr.bf16.mxu1 %v4372_v29  ;;  %v379_v27 = vld [vmem:[%s4950_s19 + $0x560] sm:$0xff] }
 0x157   : > { %3618 = vmatpush1.bf16.msra.mxu0 %v4115_v34  ;;  %v627_v28 = vld [vmem:[%s4950_s19 + $0xd20] sm:$0xff]  ;;  %v4244_v32 = vcombine.high %v371_v26, %v379_v27  ;;  %v4243_v38 = vcombine.low %v371_v26, %v379_v27 }
 0x158   : > { %3619 = vmatprep.subr.bf16.mxu0 %v4100_v36  ;;  %v635_v29 = vld [vmem:[%s4950_s19 + $0xd60] sm:$0xff] }
 0x159   : > { %3659 = vmatpush1.bf16.msra.mxu1 %v4371_v35  ;;  %v4500_v33 = vcombine.high %v627_v28, %v635_v29  ;;  %v355_v34 = vld [vmem:[%s4950_s19 + $0x4a0] sm:$0xff]  ;;  %v4499_v39 = vcombine.low %v627_v28, %v635_v29  ;;  %v4150_v29 = vcombine.high %v276_v18, %v284_v20 }
 0x15a   : > { %3660 = vmatprep.subr.bf16.mxu1 %v4356_v37  ;;  %v363_v35 = vld [vmem:[%s4950_s19 + $0x4e0] sm:$0xff] }
 0x15b   : > { %3620 = vmatpush1.bf16.msra.mxu0 %v4099_v42  ;;  %v611_v36 = vld [vmem:[%s4950_s19 + $0xca0] sm:$0xff]  ;;  %v4228_v40 = vcombine.high %v355_v34, %v363_v35  ;;  %v4227_v46 = vcombine.low %v355_v34, %v363_v35  ;;  %v516_v34 = vld [vmem:[%s4950_s19 + $0x9a8] sm:$0xff] }
 0x15c   : > { %3621 = vmatprep.subr.bf16.mxu0 %v4084_v44  ;;  %v619_v37 = vld [vmem:[%s4950_s19 + $0xce0] sm:$0xff]  ;;  %v524_v35 = vld [vmem:[%s4950_s19 + $0x9e8] sm:$0xff] }
 0x15d   : > { %3661 = vmatpush1.bf16.msra.mxu1 %v4355_v43  ;;  %v4484_v41 = vcombine.high %v611_v36, %v619_v37  ;;  %v339_v42 = vld [vmem:[%s4950_s19 + $0x420] sm:$0xff]  ;;  %v4483_v47 = vcombine.low %v611_v36, %v619_v37  ;;  %v4149_v36 = vcombine.low %v276_v18, %v284_v20  ;;  %v420_v20 = vld [vmem:[%s4950_s19 + $0x6a8] sm:$0xff] }
 0x15e   : > { %3662 = vmatprep.subr.bf16.mxu1 %v4340_v45  ;;  %v347_v43 = vld [vmem:[%s4950_s19 + $0x460] sm:$0xff] }
 0x15f   : > { %3622 = vmatpush1.bf16.msra.mxu0 %v4083_v50  ;;  %v595_v44 = vld [vmem:[%s4950_s19 + $0xc20] sm:$0xff]  ;;  %v4212_v48 = vcombine.high %v339_v42, %v347_v43  ;;  %v324_v50 = vld [vmem:[%s4950_s19 + $0x3a8] sm:$0xff]  ;;  %v4211_v54 = vcombine.low %v339_v42, %v347_v43 }
 0x160   : > { %3623 = vmatprep.subr.bf16.mxu0 %v4324_v52  ;;  %v603_v45 = vld [vmem:[%s4950_s19 + $0xc60] sm:$0xff]  ;;  %v580_v52 = vld [vmem:[%s4950_s19 + $0xba8] sm:$0xff] }
 0x161   : > { %3663 = vmatpush1.bf16.msra.mxu1 %v4339_v51  ;;  %v4468_v49 = vcombine.high %v595_v44, %v603_v45  ;;  %v332_v51 = vld [vmem:[%s4950_s19 + $0x3e8] sm:$0xff]  ;;  %v4467_v55 = vcombine.low %v595_v44, %v603_v45  ;;  %v4389_v45 = vcombine.low %v516_v34, %v524_v35 }
 0x162   : > { %3664 = vmatprep.subr.bf16.mxu1 %v4580_v53  ;;  %v588_v53 = vld [vmem:[%s4950_s19 + $0xbe8] sm:$0xff]  ;;  %v4198_v56 = vcombine.high %v324_v50, %v332_v51  ;;  %v4197_v0 = vcombine.low %v324_v50, %v332_v51 }
 0x163   : > { %3624 = vmatpush2.bf16.msra.mxu0 %v4323_v60  ;;  %v4454_v57 = vcombine.high %v580_v52, %v588_v53  ;;  %v308_v60 = vld [vmem:[%s4950_s19 + $0x328] sm:$0xff]  ;;  %v4453_v1 = vcombine.low %v580_v52, %v588_v53 }
 0x164   : > { %3625 = vmatprep.subr.bf16.mxu0 %v4308_v62  ;;  %v564_v62 = vld [vmem:[%s4950_s19 + $0xb28] sm:$0xff] }
 0x165   : > { %3665 = vmatpush2.bf16.msra.mxu1 %v4579_v61  ;;  %v316_v61 = vld [vmem:[%s4950_s19 + $0x368] sm:$0xff] }
 0x166   : > { %3666 = vmatprep.subr.bf16.mxu1 %v4564_v63  ;;  %v572_v63 = vld [vmem:[%s4950_s19 + $0xb68] sm:$0xff]  ;;  %v4182_v2 = vcombine.high %v308_v60, %v316_v61  ;;  %v4181_v10 = vcombine.low %v308_v60, %v316_v61 }
 0x167   : > { %3626 = vmatpush2.bf16.msra.mxu0 %v4307_v4  ;;  %v4438_v3 = vcombine.high %v564_v62, %v572_v63  ;;  %v292_v4 = vld [vmem:[%s4950_s19 + $0x2a8] sm:$0xff] }
 0x168   : > { %3627 = vmatprep.subr.bf16.mxu0 %v4292_v6  ;;  %v500_v42 = vld [vmem:[%s4950_s19 + $0x928] sm:$0xff] }
 0x169   : > { %3667 = vmatpush2.bf16.msra.mxu1 %v4563_v5  ;;  %v300_v5 = vld [vmem:[%s4950_s19 + $0x2e8] sm:$0xff] }
 0x16a   : > { %3668 = vmatprep.subr.bf16.mxu1 %v4548_v7  ;;  %v548_v7 = vld [vmem:[%s4950_s19 + $0xaa8] sm:$0xff]  ;;  %v4165_v26 = vcombine.low %v292_v4, %v300_v5 }
 0x16b   : > { %3628 = vmatpush2.bf16.msra.mxu0 %v4291_v12  ;;  %v4422_v17 = vcombine.high %v548_v7, %v556_v8  ;;  %v4421_v28 = vcombine.low %v548_v7, %v556_v8  ;;  %v508_v43 = vld [vmem:[%s4950_s19 + $0x968] sm:$0xff] }
 0x16c   : > { %3629 = vmatprep.subr.bf16.mxu0 %v4276_v14  ;;  %v4166_v14 = vcombine.high %v292_v4, %v300_v5  ;;  %v484_v50 = vld [vmem:[%s4950_s19 + $0x8a8] sm:$0xff]  ;;  %v4373_v53 = vcombine.low %v500_v42, %v508_v43 }
 0x16d   : > { %3669 = vmatpush2.bf16.msra.mxu1 %v4547_v13  ;;  %v4437_v13 = vcombine.low %v564_v62, %v572_v63  ;;  %v492_v51 = vld [vmem:[%s4950_s19 + $0x8e8] sm:$0xff] }
 0x16e   : > { %3670 = vmatprep.subr.bf16.mxu1 %v4532_v15  ;;  %v468_v60 = vld [vmem:[%s4950_s19 + $0x828] sm:$0xff]  ;;  %v4357_v63 = vcombine.low %v484_v50, %v492_v51 }
 0x16f   : > { %3630 = vmatpush2.bf16.msra.mxu0 %v4275_v22  ;;  %v476_v61 = vld [vmem:[%s4950_s19 + $0x868] sm:$0xff] }
 0x170   : > { %3631 = vmatprep.subr.bf16.mxu0 %v4260_v24  ;;  %v540_v24 = vld [vmem:[%s4950_s19 + $0xa68] sm:$0xff]  ;;  %v4341_v7 = vcombine.low %v468_v60, %v476_v61 }
 0x171   : > { %3671 = vmatpush2.bf16.msra.mxu1 %v4531_v23  ;;  %v532_v23 = vld [vmem:[%s4950_s19 + $0xa28] sm:$0xff] }
 0x172   : > { %3672 = vmatprep.subr.bf16.mxu1 %v4516_v25  ;;  %v4405_v37 = vcombine.low %v532_v23, %v540_v24  ;;  %v708_v4 = vld [vmem:[%s4950_s19 + $0xfa8] sm:$0xff] }
 0x173   : > { %3632 = vmatpush2.bf16.msra.mxu0 %v4259_v30  ;;  %v716_v5 = vld [vmem:[%s4950_s19 + $0xfe8] sm:$0xff] }
 0x174   : > { %3633 = vmatprep.subr.bf16.mxu0 %v4244_v32  ;;  %v260_v32 = vld [vmem:[%s4950_s19 + $0x1a8] sm:$0xff] }
 0x175   : > { %3673 = vmatpush2.bf16.msra.mxu1 %v4515_v31  ;;  %v4406_v31 = vcombine.high %v532_v23, %v540_v24  ;;  %v684_v23 = vld [vmem:[%s4950_s19 + $0xee8] sm:$0xff] }
 0x176   : > { %3674 = vmatprep.subr.bf16.mxu1 %v4500_v33  ;;  %v268_v33 = vld [vmem:[%s4950_s19 + $0x1e8] sm:$0xff] }
 0x177   : > { %3634 = vmatpush2.bf16.msra.mxu0 %v4243_v38  ;;  %v4134_v38 = vcombine.high %v260_v32, %v268_v33  ;;  %v4133_v44 = vcombine.low %v260_v32, %v268_v33 }
 0x178   : > { %3635 = vmatprep.subr.bf16.mxu0 %v4228_v40  ;;  %v244_v40 = vld [vmem:[%s4950_s19 + $0x128] sm:$0xff] }
 0x179   : > { %3675 = vmatpush2.bf16.msra.mxu1 %v4499_v39  ;;  %v4390_v39 = vcombine.high %v516_v34, %v524_v35 }
 0x17a   : > { %3676 = vmatprep.subr.bf16.mxu1 %v4484_v41  ;;  %v252_v41 = vld [vmem:[%s4950_s19 + $0x168] sm:$0xff] }
 0x17b   : > { %3636 = vmatpush2.bf16.msra.mxu0 %v4227_v46  ;;  %v4118_v46 = vcombine.high %v244_v40, %v252_v41  ;;  %v4117_v52 = vcombine.low %v244_v40, %v252_v41 }
 0x17c   : > { %3637 = vmatprep.subr.bf16.mxu0 %v4212_v48  ;;  %v228_v48 = vld [vmem:[%s4950_s19 + $0xa8] sm:$0xff] }
 0x17d   : > { %3677 = vmatpush2.bf16.msra.mxu1 %v4483_v47  ;;  %v4374_v47 = vcombine.high %v500_v42, %v508_v43 }
 0x17e   : > { %3678 = vmatprep.subr.bf16.mxu1 %v4468_v49  ;;  %v236_v49 = vld [vmem:[%s4950_s19 + $0xe8] sm:$0xff] }
 0x17f   : > { %3638 = vmatpush2.bf16.msra.mxu0 %v4211_v54  ;;  %v4102_v54 = vcombine.high %v228_v48, %v236_v49  ;;  %v4101_v62 = vcombine.low %v228_v48, %v236_v49 }
 0x180   : > { %3689 = vmatprep.subr.bf16.mxu0 %v4198_v56  ;;  %v212_v56 = vld [vmem:[%s4950_s19 + $0x28] sm:$0xff] }
 0x181   : > { %3679 = vmatpush2.bf16.msra.mxu1 %v4467_v55  ;;  %v4358_v55 = vcombine.high %v484_v50, %v492_v51 }
 0x182   : > { %3730 = vmatprep.subr.bf16.mxu1 %v4454_v57  ;;  %v3395_v6 = vpop.f32.mrf.mxu0  ;;  %3640 = vmatmul.mubr.bf16.vlgmr.msra.gmra.mxu0 %v5032_v16  ;;  %v220_v57 = vld [vmem:[%s4950_s19 + $0x68] sm:$0xff] }
 0x183   : > { %3690 = vmatpush1.bf16.msra.mxu0 %v4197_v0  ;;  %3721 = vmatprep.mubr.bf16.mxu0 %v4986_v58  ;;  %v4086_v0 = vcombine.high %v212_v56, %v220_v57 }
 0x184   : > { %v3436_v9 = vpop.f32.mrf.mxu1  ;;  %3681 = vmatmul.mubr.bf16.vlgmr.msra.gmra.mxu1 %v5036_v19  ;;  %v3397_v12 = vpop.f32.mrf.mxu0  ;;  %3691 = vmatprep.subr.bf16.mxu0 %v4182_v2  ;;  %v452_v2 = vld [vmem:[%s4950_s19 + $0x7a8] sm:$0xff] }
 0x185   : > { %v3437_v11 = vadd.f32 %v3436_v9, %v3395_v6  ;;  %3731 = vmatpush1.bf16.msra.mxu1 %v4453_v1  ;;  %3762 = vmatprep.mubr.bf16.mxu1 %v4988_v59  ;;  %v4342_v1 = vcombine.high %v468_v60, %v476_v61  ;;  %v4085_v6 = vcombine.low %v212_v56, %v220_v57 }
 0x186   : > { %v3438_v15 = vpop.f32.mrf.mxu1  ;;  %3732 = vmatprep.subr.bf16.mxu1 %v4438_v3  ;;  %v3399_v22 = vpop.f32.mrf.mxu0  ;;  %v460_v3 = vld [vmem:[%s4950_s19 + $0x7e8] sm:$0xff]  ;;  %v4582_v9 = vcombine.high %v708_v4, %v716_v5 }
 0x187   : > { %3937 = vst [vmem:[%s5252_s20 + $0x10] sm:$0xff] %v3437_v11  ;;  %v3439_v21 = vadd.f32 %v3438_v15, %v3397_v12  ;;  %3692 = vmatpush1.bf16.msra.mxu0 %v4181_v10  ;;  %v4326_v8 = vcombine.high %v452_v2, %v460_v3  ;;  %v436_v10 = vld [vmem:[%s4950_s19 + $0x728] sm:$0xff]  ;;  %v4581_v15 = vcombine.low %v708_v4, %v716_v5 }
 0x188   : > { %v3440_v25 = vpop.f32.mrf.mxu1  ;;  %v3400_v27 = vpop.f32.mrf.mxu0  ;;  %3693 = vmatprep.subr.bf16.mxu0 %v4166_v14  ;;  %v444_v11 = vld [vmem:[%s4950_s19 + $0x768] sm:$0xff]  ;;  %v4325_v14 = vcombine.low %v452_v2, %v460_v3 }
 0x189   : > { %3938 = vst [vmem:[%s5252_s20 + $0x18] sm:$0xff] %v3439_v21  ;;  %3733 = vmatpush1.bf16.msra.mxu1 %v4437_v13  ;;  %v692_v12 = vld [vmem:[%s4950_s19 + $0xf28] sm:$0xff]  ;;  %v4309_v24 = vcombine.low %v436_v10, %v444_v11 }
 0x18a   : > { %v3441_v30 = vpop.f32.mrf.mxu1  ;;  %3734 = vmatprep.subr.bf16.mxu1 %v4422_v17  ;;  %v700_v13 = vld [vmem:[%s4950_s19 + $0xf68] sm:$0xff]  ;;  %v4310_v17 = vcombine.high %v436_v10, %v444_v11 }
 0x18b   : > { %3694 = vmatpush1.bf16.msra.mxu0 %v4165_v26  ;;  %v4566_v18 = vcombine.high %v692_v12, %v700_v13  ;;  %v428_v21 = vld [vmem:[%s4950_s19 + $0x6e8] sm:$0xff]  ;;  %v4565_v25 = vcombine.low %v692_v12, %v700_v13 }
 0x18c   : > { %3695 = vmatprep.subr.bf16.mxu0 %v4150_v29  ;;  %v676_v22 = vld [vmem:[%s4950_s19 + $0xea8] sm:$0xff]  ;;  %v4294_v26 = vcombine.high %v420_v20, %v428_v21  ;;  %v4293_v32 = vcombine.low %v420_v20, %v428_v21 }
 0x18d   : > { %3735 = vmatpush1.bf16.msra.mxu1 %v4421_v28  ;;  %v4550_v27 = vcombine.high %v676_v22, %v684_v23  ;;  %v404_v28 = vld [vmem:[%s4950_s19 + $0x628] sm:$0xff]  ;;  %v4549_v33 = vcombine.low %v676_v22, %v684_v23 }
 0x18e   : > { %3736 = vmatprep.subr.bf16.mxu1 %v4406_v31  ;;  %v412_v29 = vld [vmem:[%s4950_s19 + $0x668] sm:$0xff] }
 0x18f   : > { %3696 = vmatpush1.bf16.msra.mxu0 %v4149_v36  ;;  %v660_v30 = vld [vmem:[%s4950_s19 + $0xe28] sm:$0xff]  ;;  %v4278_v34 = vcombine.high %v404_v28, %v412_v29  ;;  %v4277_v40 = vcombine.low %v404_v28, %v412_v29  ;;  %v557_v28 = vld [vmem:[%s4950_s19 + $0xaf0] sm:$0xff] }
 0x190   : > { %3697 = vmatprep.subr.bf16.mxu0 %v4134_v38  ;;  %v668_v31 = vld [vmem:[%s4950_s19 + $0xe68] sm:$0xff] }
 0x191   : > { %3737 = vmatpush1.bf16.msra.mxu1 %v4405_v37  ;;  %v4534_v35 = vcombine.high %v660_v30, %v668_v31  ;;  %v388_v36 = vld [vmem:[%s4950_s19 + $0x5a8] sm:$0xff]  ;;  %v4533_v41 = vcombine.low %v660_v30, %v668_v31 }
 0x192   : > { %3738 = vmatprep.subr.bf16.mxu1 %v4390_v39  ;;  %v396_v37 = vld [vmem:[%s4950_s19 + $0x5e8] sm:$0xff] }
 0x193   : > { %3698 = vmatpush1.bf16.msra.mxu0 %v4133_v44  ;;  %v644_v38 = vld [vmem:[%s4950_s19 + $0xda8] sm:$0xff]  ;;  %v4262_v42 = vcombine.high %v388_v36, %v396_v37  ;;  %v4261_v48 = vcombine.low %v388_v36, %v396_v37  ;;  %v277_v37 = vld [vmem:[%s4950_s19 + $0x230] sm:$0xff] }
 0x194   : > { %3699 = vmatprep.subr.bf16.mxu0 %v4118_v46  ;;  %v652_v39 = vld [vmem:[%s4950_s19 + $0xde8] sm:$0xff] }
 0x195   : > { %3739 = vmatpush1.bf16.msra.mxu1 %v4389_v45  ;;  %v4518_v43 = vcombine.high %v644_v38, %v652_v39  ;;  %v372_v44 = vld [vmem:[%s4950_s19 + $0x528] sm:$0xff]  ;;  %v4517_v49 = vcombine.low %v644_v38, %v652_v39  ;;  %v285_v38 = vld [vmem:[%s4950_s19 + $0x270] sm:$0xff] }
 0x196   : > { %3740 = vmatprep.subr.bf16.mxu1 %v4374_v47  ;;  %v380_v45 = vld [vmem:[%s4950_s19 + $0x568] sm:$0xff] }
 0x197   : > { %3700 = vmatpush1.bf16.msra.mxu0 %v4117_v52  ;;  %v628_v46 = vld [vmem:[%s4950_s19 + $0xd28] sm:$0xff]  ;;  %v4246_v50 = vcombine.high %v372_v44, %v380_v45  ;;  %v4245_v56 = vcombine.low %v372_v44, %v380_v45 }
 0x198   : > { %3701 = vmatprep.subr.bf16.mxu0 %v4102_v54  ;;  %v636_v47 = vld [vmem:[%s4950_s19 + $0xd68] sm:$0xff] }
 0x199   : > { %3741 = vmatpush1.bf16.msra.mxu1 %v4373_v53  ;;  %v4502_v51 = vcombine.high %v628_v46, %v636_v47  ;;  %v356_v52 = vld [vmem:[%s4950_s19 + $0x4a8] sm:$0xff]  ;;  %v4501_v57 = vcombine.low %v628_v46, %v636_v47  ;;  %v4152_v47 = vcombine.high %v277_v37, %v285_v38 }
 0x19a   : > { %3742 = vmatprep.subr.bf16.mxu1 %v4358_v55  ;;  %v364_v53 = vld [vmem:[%s4950_s19 + $0x4e8] sm:$0xff] }
 0x19b   : > { %3702 = vmatpush1.bf16.msra.mxu0 %v4101_v62  ;;  %v612_v54 = vld [vmem:[%s4950_s19 + $0xca8] sm:$0xff]  ;;  %v4230_v60 = vcombine.high %v356_v52, %v364_v53  ;;  %v4229_v2 = vcombine.low %v356_v52, %v364_v53  ;;  %v517_v52 = vld [vmem:[%s4950_s19 + $0x9b0] sm:$0xff] }
 0x19c   : > { %3703 = vmatprep.subr.bf16.mxu0 %v4086_v0  ;;  %v620_v55 = vld [vmem:[%s4950_s19 + $0xce8] sm:$0xff]  ;;  %v525_v53 = vld [vmem:[%s4950_s19 + $0x9f0] sm:$0xff] }
 0x19d   : > { %3743 = vmatpush1.bf16.msra.mxu1 %v4357_v63  ;;  %v4486_v61 = vcombine.high %v612_v54, %v620_v55  ;;  %v340_v62 = vld [vmem:[%s4950_s19 + $0x428] sm:$0xff]  ;;  %v4485_v3 = vcombine.low %v612_v54, %v620_v55  ;;  %v4151_v54 = vcombine.low %v277_v37, %v285_v38  ;;  %v421_v38 = vld [vmem:[%s4950_s19 + $0x6b0] sm:$0xff] }
 0x19e   : > { %3744 = vmatprep.subr.bf16.mxu1 %v4342_v1  ;;  %v348_v63 = vld [vmem:[%s4950_s19 + $0x468] sm:$0xff] }
 0x19f   : > { %3704 = vmatpush1.bf16.msra.mxu0 %v4085_v6  ;;  %v596_v0 = vld [vmem:[%s4950_s19 + $0xc28] sm:$0xff]  ;;  %v4214_v4 = vcombine.high %v340_v62, %v348_v63  ;;  %v325_v6 = vld [vmem:[%s4950_s19 + $0x3b0] sm:$0xff]  ;;  %v4213_v10 = vcombine.low %v340_v62, %v348_v63 }
 0x1a0   : > { %3705 = vmatprep.subr.bf16.mxu0 %v4326_v8  ;;  %v604_v1 = vld [vmem:[%s4950_s19 + $0xc68] sm:$0xff]  ;;  %v581_v8 = vld [vmem:[%s4950_s19 + $0xbb0] sm:$0xff] }
 0x1a1   : > { %3745 = vmatpush1.bf16.msra.mxu1 %v4341_v7  ;;  %v4470_v5 = vcombine.high %v596_v0, %v604_v1  ;;  %v333_v7 = vld [vmem:[%s4950_s19 + $0x3f0] sm:$0xff]  ;;  %v4469_v11 = vcombine.low %v596_v0, %v604_v1  ;;  %v4391_v1 = vcombine.low %v517_v52, %v525_v53 }
 0x1a2   : > { %3746 = vmatprep.subr.bf16.mxu1 %v4582_v9  ;;  %v589_v9 = vld [vmem:[%s4950_s19 + $0xbf0] sm:$0xff]  ;;  %v4200_v12 = vcombine.high %v325_v6, %v333_v7  ;;  %v4199_v20 = vcombine.low %v325_v6, %v333_v7 }
 0x1a3   : > { %3706 = vmatpush2.bf16.msra.mxu0 %v4325_v14  ;;  %v4456_v13 = vcombine.high %v581_v8, %v589_v9  ;;  %v309_v14 = vld [vmem:[%s4950_s19 + $0x330] sm:$0xff]  ;;  %v4455_v21 = vcombine.low %v581_v8, %v589_v9 }
 0x1a4   : > { %3707 = vmatprep.subr.bf16.mxu0 %v4310_v17  ;;  %v565_v17 = vld [vmem:[%s4950_s19 + $0xb30] sm:$0xff] }
 0x1a5   : > { %3747 = vmatpush2.bf16.msra.mxu1 %v4581_v15  ;;  %v317_v15 = vld [vmem:[%s4950_s19 + $0x370] sm:$0xff] }
 0x1a6   : > { %3748 = vmatprep.subr.bf16.mxu1 %v4566_v18  ;;  %v573_v18 = vld [vmem:[%s4950_s19 + $0xb70] sm:$0xff]  ;;  %v4184_v22 = vcombine.high %v309_v14, %v317_v15  ;;  %v4183_v30 = vcombine.low %v309_v14, %v317_v15 }
 0x1a7   : > { %3708 = vmatpush2.bf16.msra.mxu0 %v4309_v24  ;;  %v4440_v23 = vcombine.high %v565_v17, %v573_v18  ;;  %v293_v24 = vld [vmem:[%s4950_s19 + $0x2b0] sm:$0xff] }
 0x1a8   : > { %3709 = vmatprep.subr.bf16.mxu0 %v4294_v26  ;;  %v501_v62 = vld [vmem:[%s4950_s19 + $0x930] sm:$0xff] }
 0x1a9   : > { %3749 = vmatpush2.bf16.msra.mxu1 %v4565_v25  ;;  %v301_v25 = vld [vmem:[%s4950_s19 + $0x2f0] sm:$0xff] }
 0x1aa   : > { %3750 = vmatprep.subr.bf16.mxu1 %v4550_v27  ;;  %v549_v27 = vld [vmem:[%s4950_s19 + $0xab0] sm:$0xff]  ;;  %v4167_v44 = vcombine.low %v293_v24, %v301_v25 }
 0x1ab   : > { %3710 = vmatpush2.bf16.msra.mxu0 %v4293_v32  ;;  %v4424_v36 = vcombine.high %v549_v27, %v557_v28  ;;  %v4423_v46 = vcombine.low %v549_v27, %v557_v28  ;;  %v509_v63 = vld [vmem:[%s4950_s19 + $0x970] sm:$0xff] }
 0x1ac   : > { %3711 = vmatprep.subr.bf16.mxu0 %v4278_v34  ;;  %v4168_v34 = vcombine.high %v293_v24, %v301_v25  ;;  %v485_v6 = vld [vmem:[%s4950_s19 + $0x8b0] sm:$0xff]  ;;  %v4375_v9 = vcombine.low %v501_v62, %v509_v63 }
 0x1ad   : > { %3751 = vmatpush2.bf16.msra.mxu1 %v4549_v33  ;;  %v4439_v33 = vcombine.low %v565_v17, %v573_v18  ;;  %v493_v7 = vld [vmem:[%s4950_s19 + $0x8f0] sm:$0xff] }
 0x1ae   : > { %3752 = vmatprep.subr.bf16.mxu1 %v4534_v35  ;;  %v469_v14 = vld [vmem:[%s4950_s19 + $0x830] sm:$0xff]  ;;  %v4359_v18 = vcombine.low %v485_v6, %v493_v7 }
 0x1af   : > { %3712 = vmatpush2.bf16.msra.mxu0 %v4277_v40  ;;  %v477_v15 = vld [vmem:[%s4950_s19 + $0x870] sm:$0xff] }
 0x1b0   : > { %3713 = vmatprep.subr.bf16.mxu0 %v4262_v42  ;;  %v541_v42 = vld [vmem:[%s4950_s19 + $0xa70] sm:$0xff]  ;;  %v4343_v27 = vcombine.low %v469_v14, %v477_v15 }
 0x1b1   : > { %3753 = vmatpush2.bf16.msra.mxu1 %v4533_v41  ;;  %v533_v41 = vld [vmem:[%s4950_s19 + $0xa30] sm:$0xff] }
 0x1b2   : > { %3754 = vmatprep.subr.bf16.mxu1 %v4518_v43  ;;  %v4407_v55 = vcombine.low %v533_v41, %v541_v42  ;;  %v709_v24 = vld [vmem:[%s4950_s19 + $0xfb0] sm:$0xff] }
 0x1b3   : > { %3714 = vmatpush2.bf16.msra.mxu0 %v4261_v48  ;;  %v717_v25 = vld [vmem:[%s4950_s19 + $0xff0] sm:$0xff] }
 0x1b4   : > { %3715 = vmatprep.subr.bf16.mxu0 %v4246_v50  ;;  %v261_v50 = vld [vmem:[%s4950_s19 + $0x1b0] sm:$0xff] }
 0x1b5   : > { %3755 = vmatpush2.bf16.msra.mxu1 %v4517_v49  ;;  %v4408_v49 = vcombine.high %v533_v41, %v541_v42  ;;  %v685_v41 = vld [vmem:[%s4950_s19 + $0xef0] sm:$0xff] }
 0x1b6   : > { %3756 = vmatprep.subr.bf16.mxu1 %v4502_v51  ;;  %v269_v51 = vld [vmem:[%s4950_s19 + $0x1f0] sm:$0xff] }
 0x1b7   : > { %3716 = vmatpush2.bf16.msra.mxu0 %v4245_v56  ;;  %v4136_v56 = vcombine.high %v261_v50, %v269_v51  ;;  %v4135_v0 = vcombine.low %v261_v50, %v269_v51 }
 0x1b8   : > { %3717 = vmatprep.subr.bf16.mxu0 %v4230_v60  ;;  %v245_v60 = vld [vmem:[%s4950_s19 + $0x130] sm:$0xff] }
 0x1b9   : > { %3757 = vmatpush2.bf16.msra.mxu1 %v4501_v57  ;;  %v4392_v57 = vcombine.high %v517_v52, %v525_v53 }
 0x1ba   : > { %3758 = vmatprep.subr.bf16.mxu1 %v4486_v61  ;;  %v253_v61 = vld [vmem:[%s4950_s19 + $0x170] sm:$0xff] }
 0x1bb   : > { %3718 = vmatpush2.bf16.msra.mxu0 %v4229_v2  ;;  %v4120_v2 = vcombine.high %v245_v60, %v253_v61  ;;  %v4119_v8 = vcombine.low %v245_v60, %v253_v61 }
 0x1bc   : > { %3719 = vmatprep.subr.bf16.mxu0 %v4214_v4  ;;  %v229_v4 = vld [vmem:[%s4950_s19 + $0xb0] sm:$0xff] }
 0x1bd   : > { %3759 = vmatpush2.bf16.msra.mxu1 %v4485_v3  ;;  %v4376_v3 = vcombine.high %v501_v62, %v509_v63 }
 0x1be   : > { %3760 = vmatprep.subr.bf16.mxu1 %v4470_v5  ;;  %v237_v5 = vld [vmem:[%s4950_s19 + $0xf0] sm:$0xff] }
 0x1bf   : > { %3720 = vmatpush2.bf16.msra.mxu0 %v4213_v10  ;;  %v4104_v10 = vcombine.high %v229_v4, %v237_v5  ;;  %v4103_v17 = vcombine.low %v229_v4, %v237_v5 }
 0x1c0   : > { %3771 = vmatprep.subr.bf16.mxu0 %v4200_v12  ;;  %v213_v12 = vld [vmem:[%s4950_s19 + $0x30] sm:$0xff] }
 0x1c1   : > { %3761 = vmatpush2.bf16.msra.mxu1 %v4469_v11  ;;  %v4360_v11 = vcombine.high %v485_v6, %v493_v7 }
 0x1c2   : > { %3812 = vmatprep.subr.bf16.mxu1 %v4456_v13  ;;  %v3477_v26 = vpop.f32.mrf.mxu0  ;;  %3722 = vmatmul.mubr.bf16.vlgmr.msra.gmra.mxu0 %v5032_v16  ;;  %v221_v13 = vld [vmem:[%s4950_s19 + $0x70] sm:$0xff] }
 0x1c3   : > { %3772 = vmatpush1.bf16.msra.mxu0 %v4199_v20  ;;  %3803 = vmatprep.mubr.bf16.mxu0 %v4986_v58  ;;  %v4088_v20 = vcombine.high %v213_v12, %v221_v13 }
 0x1c4   : > { %v3518_v29 = vpop.f32.mrf.mxu1  ;;  %3763 = vmatmul.mubr.bf16.vlgmr.msra.gmra.mxu1 %v5036_v19  ;;  %v3479_v32 = vpop.f32.mrf.mxu0  ;;  %3773 = vmatprep.subr.bf16.mxu0 %v4184_v22  ;;  %v453_v22 = vld [vmem:[%s4950_s19 + $0x7b0] sm:$0xff] }
 0x1c5   : > { %v3519_v31 = vadd.f32 %v3518_v29, %v3477_v26  ;;  %3813 = vmatpush1.bf16.msra.mxu1 %v4455_v21  ;;  %3844 = vmatprep.mubr.bf16.mxu1 %v4988_v59  ;;  %v4344_v21 = vcombine.high %v469_v14, %v477_v15  ;;  %v4087_v26 = vcombine.low %v213_v12, %v221_v13 }
 0x1c6   : > { %v3520_v35 = vpop.f32.mrf.mxu1  ;;  %3814 = vmatprep.subr.bf16.mxu1 %v4440_v23  ;;  %v3481_v40 = vpop.f32.mrf.mxu0  ;;  %v461_v23 = vld [vmem:[%s4950_s19 + $0x7f0] sm:$0xff]  ;;  %v4584_v29 = vcombine.high %v709_v24, %v717_v25 }
 0x1c7   : > { %3939 = vst [vmem:[%s5252_s20 + $0x20] sm:$0xff] %v3519_v31  ;;  %v3521_v39 = vadd.f32 %v3520_v35, %v3479_v32  ;;  %3774 = vmatpush1.bf16.msra.mxu0 %v4183_v30  ;;  %v4328_v28 = vcombine.high %v453_v22, %v461_v23  ;;  %v437_v30 = vld [vmem:[%s4950_s19 + $0x730] sm:$0xff]  ;;  %v4583_v35 = vcombine.low %v709_v24, %v717_v25 }
 0x1c8   : > { %v3522_v43 = vpop.f32.mrf.mxu1  ;;  %v3482_v45 = vpop.f32.mrf.mxu0  ;;  %3775 = vmatprep.subr.bf16.mxu0 %v4168_v34  ;;  %v445_v31 = vld [vmem:[%s4950_s19 + $0x770] sm:$0xff]  ;;  %v4327_v34 = vcombine.low %v453_v22, %v461_v23 }
 0x1c9   : > { %3940 = vst [vmem:[%s5252_s20 + $0x28] sm:$0xff] %v3521_v39  ;;  %3815 = vmatpush1.bf16.msra.mxu1 %v4439_v33  ;;  %v693_v32 = vld [vmem:[%s4950_s19 + $0xf30] sm:$0xff]  ;;  %v4311_v42 = vcombine.low %v437_v30, %v445_v31 }
 0x1ca   : > { %v3523_v48 = vpop.f32.mrf.mxu1  ;;  %3816 = vmatprep.subr.bf16.mxu1 %v4424_v36  ;;  %v701_v33 = vld [vmem:[%s4950_s19 + $0xf70] sm:$0xff]  ;;  %v4312_v36 = vcombine.high %v437_v30, %v445_v31 }
 0x1cb   : > { %3776 = vmatpush1.bf16.msra.mxu0 %v4167_v44  ;;  %v4568_v37 = vcombine.high %v693_v32, %v701_v33  ;;  %v429_v39 = vld [vmem:[%s4950_s19 + $0x6f0] sm:$0xff]  ;;  %v4567_v43 = vcombine.low %v693_v32, %v701_v33 }
 0x1cc   : > { %3777 = vmatprep.subr.bf16.mxu0 %v4152_v47  ;;  %v677_v40 = vld [vmem:[%s4950_s19 + $0xeb0] sm:$0xff]  ;;  %v4296_v44 = vcombine.high %v421_v38, %v429_v39  ;;  %v4295_v50 = vcombine.low %v421_v38, %v429_v39 }
 0x1cd   : > { %3817 = vmatpush1.bf16.msra.mxu1 %v4423_v46  ;;  %v4552_v45 = vcombine.high %v677_v40, %v685_v41  ;;  %v405_v46 = vld [vmem:[%s4950_s19 + $0x630] sm:$0xff]  ;;  %v4551_v51 = vcombine.low %v677_v40, %v685_v41 }
 0x1ce   : > { %3818 = vmatprep.subr.bf16.mxu1 %v4408_v49  ;;  %v413_v47 = vld [vmem:[%s4950_s19 + $0x670] sm:$0xff] }
 0x1cf   : > { %3778 = vmatpush1.bf16.msra.mxu0 %v4151_v54  ;;  %v661_v48 = vld [vmem:[%s4950_s19 + $0xe30] sm:$0xff]  ;;  %v4280_v52 = vcombine.high %v405_v46, %v413_v47  ;;  %v4279_v60 = vcombine.low %v405_v46, %v413_v47  ;;  %v558_v46 = vld [vmem:[%s4950_s19 + $0xaf8] sm:$0xff] }
 0x1d0   : > { %3779 = vmatprep.subr.bf16.mxu0 %v4136_v56  ;;  %v669_v49 = vld [vmem:[%s4950_s19 + $0xe70] sm:$0xff] }
 0x1d1   : > { %3819 = vmatpush1.bf16.msra.mxu1 %v4407_v55  ;;  %v4536_v53 = vcombine.high %v661_v48, %v669_v49  ;;  %v389_v54 = vld [vmem:[%s4950_s19 + $0x5b0] sm:$0xff]  ;;  %v4535_v61 = vcombine.low %v661_v48, %v669_v49 }
 0x1d2   : > { %3820 = vmatprep.subr.bf16.mxu1 %v4392_v57  ;;  %v397_v55 = vld [vmem:[%s4950_s19 + $0x5f0] sm:$0xff] }
 0x1d3   : > { %3780 = vmatpush1.bf16.msra.mxu0 %v4135_v0  ;;  %v645_v56 = vld [vmem:[%s4950_s19 + $0xdb0] sm:$0xff]  ;;  %v4264_v62 = vcombine.high %v389_v54, %v397_v55  ;;  %v4263_v4 = vcombine.low %v389_v54, %v397_v55  ;;  %v278_v55 = vld [vmem:[%s4950_s19 + $0x238] sm:$0xff] }
 0x1d4   : > { %3781 = vmatprep.subr.bf16.mxu0 %v4120_v2  ;;  %v653_v57 = vld [vmem:[%s4950_s19 + $0xdf0] sm:$0xff] }
 0x1d5   : > { %3821 = vmatpush1.bf16.msra.mxu1 %v4391_v1  ;;  %v4520_v63 = vcombine.high %v645_v56, %v653_v57  ;;  %v373_v0 = vld [vmem:[%s4950_s19 + $0x530] sm:$0xff]  ;;  %v4519_v5 = vcombine.low %v645_v56, %v653_v57  ;;  %v286_v56 = vld [vmem:[%s4950_s19 + $0x278] sm:$0xff] }
 0x1d6   : > { %3822 = vmatprep.subr.bf16.mxu1 %v4376_v3  ;;  %v381_v1 = vld [vmem:[%s4950_s19 + $0x570] sm:$0xff] }
 0x1d7   : > { %3782 = vmatpush1.bf16.msra.mxu0 %v4119_v8  ;;  %v629_v2 = vld [vmem:[%s4950_s19 + $0xd30] sm:$0xff]  ;;  %v4248_v6 = vcombine.high %v373_v0, %v381_v1  ;;  %v4247_v12 = vcombine.low %v373_v0, %v381_v1 }
 0x1d8   : > { %3783 = vmatprep.subr.bf16.mxu0 %v4104_v10  ;;  %v637_v3 = vld [vmem:[%s4950_s19 + $0xd70] sm:$0xff] }
 0x1d9   : > { %3823 = vmatpush1.bf16.msra.mxu1 %v4375_v9  ;;  %v4504_v7 = vcombine.high %v629_v2, %v637_v3  ;;  %v357_v8 = vld [vmem:[%s4950_s19 + $0x4b0] sm:$0xff]  ;;  %v4503_v13 = vcombine.low %v629_v2, %v637_v3 }
 0x1da   : > { %3824 = vmatprep.subr.bf16.mxu1 %v4360_v11  ;;  %v365_v9 = vld [vmem:[%s4950_s19 + $0x4f0] sm:$0xff] }
 0x1db   : > { %3784 = vmatpush1.bf16.msra.mxu0 %v4103_v17  ;;  %v613_v10 = vld [vmem:[%s4950_s19 + $0xcb0] sm:$0xff]  ;;  %v4232_v14 = vcombine.high %v357_v8, %v365_v9  ;;  %v4231_v22 = vcombine.low %v357_v8, %v365_v9  ;;  %v4153_v8 = vcombine.low %v278_v55, %v286_v56 }
 0x1dc   : > { %3785 = vmatprep.subr.bf16.mxu0 %v4088_v20  ;;  %v621_v11 = vld [vmem:[%s4950_s19 + $0xcf0] sm:$0xff] }
 0x1dd   : > { %3825 = vmatpush1.bf16.msra.mxu1 %v4359_v18  ;;  %v4488_v15 = vcombine.high %v613_v10, %v621_v11  ;;  %v341_v17 = vld [vmem:[%s4950_s19 + $0x430] sm:$0xff]  ;;  %v4487_v23 = vcombine.low %v613_v10, %v621_v11 }
 0x1de   : > { %3826 = vmatprep.subr.bf16.mxu1 %v4344_v21  ;;  %v349_v18 = vld [vmem:[%s4950_s19 + $0x470] sm:$0xff] }
 0x1df   : > { %3786 = vmatpush1.bf16.msra.mxu0 %v4087_v26  ;;  %v597_v20 = vld [vmem:[%s4950_s19 + $0xc30] sm:$0xff]  ;;  %v4216_v24 = vcombine.high %v341_v17, %v349_v18  ;;  %v326_v26 = vld [vmem:[%s4950_s19 + $0x3b8] sm:$0xff]  ;;  %v4215_v30 = vcombine.low %v341_v17, %v349_v18 }
 0x1e0   : > { %3787 = vmatprep.subr.bf16.mxu0 %v4328_v28  ;;  %v605_v21 = vld [vmem:[%s4950_s19 + $0xc70] sm:$0xff]  ;;  %v582_v28 = vld [vmem:[%s4950_s19 + $0xbb8] sm:$0xff] }
 0x1e1   : > { %3827 = vmatpush1.bf16.msra.mxu1 %v4343_v27  ;;  %v4472_v25 = vcombine.high %v597_v20, %v605_v21  ;;  %v334_v27 = vld [vmem:[%s4950_s19 + $0x3f8] sm:$0xff]  ;;  %v4471_v31 = vcombine.low %v597_v20, %v605_v21 }
 0x1e2   : > { %3828 = vmatprep.subr.bf16.mxu1 %v4584_v29  ;;  %v590_v29 = vld [vmem:[%s4950_s19 + $0xbf8] sm:$0xff]  ;;  %v4202_v32 = vcombine.high %v326_v26, %v334_v27  ;;  %v4201_v38 = vcombine.low %v326_v26, %v334_v27 }
 0x1e3   : > { %3788 = vmatpush2.bf16.msra.mxu0 %v4327_v34  ;;  %v4458_v33 = vcombine.high %v582_v28, %v590_v29  ;;  %v310_v34 = vld [vmem:[%s4950_s19 + $0x338] sm:$0xff]  ;;  %v4457_v39 = vcombine.low %v582_v28, %v590_v29 }
 0x1e4   : > { %3789 = vmatprep.subr.bf16.mxu0 %v4312_v36  ;;  %v566_v36 = vld [vmem:[%s4950_s19 + $0xb38] sm:$0xff] }
 0x1e5   : > { %3829 = vmatpush2.bf16.msra.mxu1 %v4583_v35  ;;  %v318_v35 = vld [vmem:[%s4950_s19 + $0x378] sm:$0xff] }
 0x1e6   : > { %3830 = vmatprep.subr.bf16.mxu1 %v4568_v37  ;;  %v574_v37 = vld [vmem:[%s4950_s19 + $0xb78] sm:$0xff]  ;;  %v4186_v40 = vcombine.high %v310_v34, %v318_v35  ;;  %v4185_v48 = vcombine.low %v310_v34, %v318_v35 }
 0x1e7   : > { %3790 = vmatpush2.bf16.msra.mxu0 %v4311_v42  ;;  %v4442_v41 = vcombine.high %v566_v36, %v574_v37  ;;  %v294_v42 = vld [vmem:[%s4950_s19 + $0x2b8] sm:$0xff] }
 0x1e8   : > { %3791 = vmatprep.subr.bf16.mxu0 %v4296_v44 }
 0x1e9   : > { %3831 = vmatpush2.bf16.msra.mxu1 %v4567_v43  ;;  %v302_v43 = vld [vmem:[%s4950_s19 + $0x2f8] sm:$0xff] }
 0x1ea   : > { %3832 = vmatprep.subr.bf16.mxu1 %v4552_v45  ;;  %v550_v45 = vld [vmem:[%s4950_s19 + $0xab8] sm:$0xff]  ;;  %v4169_v0 = vcombine.low %v294_v42, %v302_v43 }
 0x1eb   : > { %3792 = vmatpush2.bf16.msra.mxu0 %v4295_v50  ;;  %v4426_v54 = vcombine.high %v550_v45, %v558_v46  ;;  %v4425_v2 = vcombine.low %v550_v45, %v558_v46  ;;  %v438_v46 = vld [vmem:[%s4950_s19 + $0x738] sm:$0xff] }
 0x1ec   : > { %3793 = vmatprep.subr.bf16.mxu0 %v4280_v52  ;;  %v4170_v52 = vcombine.high %v294_v42, %v302_v43 }
 0x1ed   : > { %3833 = vmatpush2.bf16.msra.mxu1 %v4551_v51  ;;  %v4441_v51 = vcombine.low %v566_v36, %v574_v37 }
 0x1ee   : > { %3834 = vmatprep.subr.bf16.mxu1 %v4536_v53 }
 0x1ef   : > { %3794 = vmatpush2.bf16.msra.mxu0 %v4279_v60 }
 0x1f0   : > { %3795 = vmatprep.subr.bf16.mxu0 %v4264_v62  ;;  %v542_v62 = vld [vmem:[%s4950_s19 + $0xa78] sm:$0xff] }
 0x1f1   : > { %3835 = vmatpush2.bf16.msra.mxu1 %v4535_v61  ;;  %v534_v61 = vld [vmem:[%s4950_s19 + $0xa38] sm:$0xff] }
 0x1f2   : > { %3836 = vmatprep.subr.bf16.mxu1 %v4520_v63  ;;  %v4409_v9 = vcombine.low %v534_v61, %v542_v62 }
 0x1f3   : > { %3796 = vmatpush2.bf16.msra.mxu0 %v4263_v4  ;;  %v4410_v4 = vcombine.high %v534_v61, %v542_v62 }
 0x1f4   : > { %3797 = vmatprep.subr.bf16.mxu0 %v4248_v6  ;;  %v270_v6 = vld [vmem:[%s4950_s19 + $0x1f8] sm:$0xff] }
 0x1f5   : > { %3837 = vmatpush2.bf16.msra.mxu1 %v4519_v5  ;;  %v262_v5 = vld [vmem:[%s4950_s19 + $0x1b8] sm:$0xff] }
 0x1f6   : > { %3838 = vmatprep.subr.bf16.mxu1 %v4504_v7  ;;  %v526_v7 = vld [vmem:[%s4950_s19 + $0x9f8] sm:$0xff]  ;;  %v4138_v10 = vcombine.high %v262_v5, %v270_v6  ;;  %v4137_v17 = vcombine.low %v262_v5, %v270_v6 }
 0x1f7   : > { %3798 = vmatpush2.bf16.msra.mxu0 %v4247_v12  ;;  %v246_v12 = vld [vmem:[%s4950_s19 + $0x138] sm:$0xff] }
 0x1f8   : > { %3799 = vmatprep.subr.bf16.mxu0 %v4232_v14  ;;  %v502_v14 = vld [vmem:[%s4950_s19 + $0x938] sm:$0xff] }
 0x1f9   : > { %3839 = vmatpush2.bf16.msra.mxu1 %v4503_v13  ;;  %v254_v13 = vld [vmem:[%s4950_s19 + $0x178] sm:$0xff] }
 0x1fa   : > { %3840 = vmatprep.subr.bf16.mxu1 %v4488_v15  ;;  %v510_v15 = vld [vmem:[%s4950_s19 + $0x978] sm:$0xff]  ;;  %v4122_v20 = vcombine.high %v246_v12, %v254_v13  ;;  %v4121_v26 = vcombine.low %v246_v12, %v254_v13 }
 0x1fb   : > { %3800 = vmatpush2.bf16.msra.mxu0 %v4231_v22  ;;  %v4378_v21 = vcombine.high %v502_v14, %v510_v15  ;;  %v230_v22 = vld [vmem:[%s4950_s19 + $0xb8] sm:$0xff]  ;;  %v4377_v27 = vcombine.low %v502_v14, %v510_v15 }
 0x1fc   : > { %3801 = vmatprep.subr.bf16.mxu0 %v4216_v24  ;;  %v486_v24 = vld [vmem:[%s4950_s19 + $0x8b8] sm:$0xff] }
 0x1fd   : > { %3841 = vmatpush2.bf16.msra.mxu1 %v4487_v23  ;;  %v238_v23 = vld [vmem:[%s4950_s19 + $0xf8] sm:$0xff] }
 0x1fe   : > { %3842 = vmatprep.subr.bf16.mxu1 %v4472_v25  ;;  %v494_v25 = vld [vmem:[%s4950_s19 + $0x8f8] sm:$0xff]  ;;  %v4106_v28 = vcombine.high %v230_v22, %v238_v23  ;;  %v4105_v34 = vcombine.low %v230_v22, %v238_v23 }
 0x1ff   : > { %3802 = vmatpush2.bf16.msra.mxu0 %v4215_v30  ;;  %v4362_v29 = vcombine.high %v486_v24, %v494_v25  ;;  %v214_v30 = vld [vmem:[%s4950_s19 + $0x38] sm:$0xff]  ;;  %v4361_v35 = vcombine.low %v486_v24, %v494_v25 }
 0x200   : > { %3853 = vmatprep.subr.bf16.mxu0 %v4202_v32  ;;  %v470_v32 = vld [vmem:[%s4950_s19 + $0x838] sm:$0xff] }
 0x201   : > { %3843 = vmatpush2.bf16.msra.mxu1 %v4471_v31  ;;  %v222_v31 = vld [vmem:[%s4950_s19 + $0x78] sm:$0xff] }
 0x202   : > { %3894 = vmatprep.subr.bf16.mxu1 %v4458_v33  ;;  %v3559_v44 = vpop.f32.mrf.mxu0  ;;  %3804 = vmatmul.mubr.bf16.vlgmr.msra.gmra.mxu0 %v5032_v16  ;;  %v478_v33 = vld [vmem:[%s4950_s19 + $0x878] sm:$0xff]  ;;  %v4090_v36 = vcombine.high %v214_v30, %v222_v31  ;;  %v4089_v42 = vcombine.low %v214_v30, %v222_v31 }
 0x203   : > { %3854 = vmatpush1.bf16.msra.mxu0 %v4201_v38  ;;  %3885 = vmatprep.mubr.bf16.mxu0 %v4986_v58  ;;  %v4154_v58 = vcombine.high %v278_v55, %v286_v56  ;;  %v4346_v37 = vcombine.high %v470_v32, %v478_v33  ;;  %v454_v38 = vld [vmem:[%s4950_s19 + $0x7b8] sm:$0xff]  ;;  %v4345_v43 = vcombine.low %v470_v32, %v478_v33 }
 0x204   : > { %v3600_v47 = vpop.f32.mrf.mxu1  ;;  %3845 = vmatmul.mubr.bf16.vlgmr.msra.gmra.mxu1 %v5036_v19  ;;  %v3561_v50 = vpop.f32.mrf.mxu0  ;;  %3855 = vmatprep.subr.bf16.mxu0 %v4186_v40  ;;  %v710_v40 = vld [vmem:[%s4950_s19 + $0xfb8] sm:$0xff] }
 0x205   : > { %v3601_v49 = vadd.f32 %v3600_v47, %v3559_v44  ;;  %3895 = vmatpush1.bf16.msra.mxu1 %v4457_v39  ;;  %3926 = vmatprep.mubr.bf16.mxu1 %v4988_v59  ;;  %v518_v59 = vld [vmem:[%s4950_s19 + $0x9b8] sm:$0xff] }
 0x206   : > { %v3602_v53 = vpop.f32.mrf.mxu1  ;;  %3896 = vmatprep.subr.bf16.mxu1 %v4442_v41  ;;  %v3563_v60 = vpop.f32.mrf.mxu0  ;;  %v4394_v11 = vcombine.high %v518_v59, %v526_v7  ;;  %v4393_v18 = vcombine.low %v518_v59, %v526_v7  ;;  %v462_v39 = vld [vmem:[%s4950_s19 + $0x7f8] sm:$0xff] }
 0x207   : > { %3941 = vst [vmem:[%s5252_s20 + $0x30] sm:$0xff] %v3601_v49  ;;  %v3603_v57 = vadd.f32 %v3602_v53, %v3561_v50  ;;  %3856 = vmatpush1.bf16.msra.mxu0 %v4185_v48  ;;  %v718_v41 = vld [vmem:[%s4950_s19 + $0xff8] sm:$0xff]  ;;  %v4330_v44 = vcombine.high %v454_v38, %v462_v39  ;;  %v4329_v50 = vcombine.low %v454_v38, %v462_v39 }
 0x208   : > { %v3604_v63 = vpop.f32.mrf.mxu1  ;;  %v3564_v1 = vpop.f32.mrf.mxu0  ;;  %3857 = vmatprep.subr.bf16.mxu0 %v4170_v52  ;;  %v4586_v45 = vcombine.high %v710_v40, %v718_v41  ;;  %v446_v47 = vld [vmem:[%s4950_s19 + $0x778] sm:$0xff] }
 0x209   : > { %3942 = vst [vmem:[%s5252_s20 + $0x38] sm:$0xff] %v3603_v57  ;;  %3897 = vmatpush1.bf16.msra.mxu1 %v4441_v51  ;;  %v694_v48 = vld [vmem:[%s4950_s19 + $0xf38] sm:$0xff]  ;;  %v4585_v51 = vcombine.low %v710_v40, %v718_v41  ;;  %v4314_v52 = vcombine.high %v438_v46, %v446_v47  ;;  %v4313_v60 = vcombine.low %v438_v46, %v446_v47 }
 0x20a   : > { %v3605_v3 = vpop.f32.mrf.mxu1  ;;  %3898 = vmatprep.subr.bf16.mxu1 %v4426_v54  ;;  %v702_v49 = vld [vmem:[%s4950_s19 + $0xf78] sm:$0xff] }
 0x20b   : > { %3858 = vmatpush1.bf16.msra.mxu0 %v4169_v0  ;;  %v4570_v53 = vcombine.high %v694_v48, %v702_v49  ;;  %v422_v54 = vld [vmem:[%s4950_s19 + $0x6b8] sm:$0xff]  ;;  %v4569_v61 = vcombine.low %v694_v48, %v702_v49 }
 0x20c   : > { %3859 = vmatprep.subr.bf16.mxu0 %v4154_v58  ;;  %v430_v55 = vld [vmem:[%s4950_s19 + $0x6f8] sm:$0xff] }
 0x20d   : > { %3899 = vmatpush1.bf16.msra.mxu1 %v4425_v2  ;;  %v678_v56 = vld [vmem:[%s4950_s19 + $0xeb8] sm:$0xff]  ;;  %v4298_v62 = vcombine.high %v422_v54, %v430_v55  ;;  %v4297_v3 = vcombine.low %v422_v54, %v430_v55 }
 0x20e   : > { %3900 = vmatprep.subr.bf16.mxu1 %v4410_v4  ;;  %v686_v57 = vld [vmem:[%s4950_s19 + $0xef8] sm:$0xff] }
 0x20f   : > { %3860 = vmatpush1.bf16.msra.mxu0 %v4153_v8  ;;  %v4554_v63 = vcombine.high %v678_v56, %v686_v57  ;;  %v406_v0 = vld [vmem:[%s4950_s19 + $0x638] sm:$0xff]  ;;  %v4553_v4 = vcombine.low %v678_v56, %v686_v57 }
 0x210   : > { %3861 = vmatprep.subr.bf16.mxu0 %v4138_v10  ;;  %v414_v1 = vld [vmem:[%s4950_s19 + $0x678] sm:$0xff] }
 0x211   : > { %3901 = vmatpush1.bf16.msra.mxu1 %v4409_v9  ;;  %v662_v2 = vld [vmem:[%s4950_s19 + $0xe38] sm:$0xff]  ;;  %v4282_v5 = vcombine.high %v406_v0, %v414_v1  ;;  %v4281_v10 = vcombine.low %v406_v0, %v414_v1 }
 0x212   : > { %3902 = vmatprep.subr.bf16.mxu1 %v4394_v11  ;;  %v670_v58 = vld [vmem:[%s4950_s19 + $0xe78] sm:$0xff] }
 0x213   : > { %3862 = vmatpush1.bf16.msra.mxu0 %v4137_v17  ;;  %v4538_v6 = vcombine.high %v662_v2, %v670_v58  ;;  %v390_v59 = vld [vmem:[%s4950_s19 + $0x5b8] sm:$0xff]  ;;  %v4537_v11 = vcombine.low %v662_v2, %v670_v58 }
 0x214   : > { %3863 = vmatprep.subr.bf16.mxu0 %v4122_v20  ;;  %v398_v7 = vld [vmem:[%s4950_s19 + $0x5f8] sm:$0xff] }
 0x215   : > { %3903 = vmatpush1.bf16.msra.mxu1 %v4393_v18  ;;  %v646_v8 = vld [vmem:[%s4950_s19 + $0xdb8] sm:$0xff]  ;;  %v4266_v12 = vcombine.high %v390_v59, %v398_v7  ;;  %v4265_v20 = vcombine.low %v390_v59, %v398_v7 }
 0x216   : > { %3904 = vmatprep.subr.bf16.mxu1 %v4378_v21  ;;  %v654_v9 = vld [vmem:[%s4950_s19 + $0xdf8] sm:$0xff] }
 0x217   : > { %3864 = vmatpush1.bf16.msra.mxu0 %v4121_v26  ;;  %v4522_v13 = vcombine.high %v646_v8, %v654_v9  ;;  %v374_v14 = vld [vmem:[%s4950_s19 + $0x538] sm:$0xff]  ;;  %v4521_v21 = vcombine.low %v646_v8, %v654_v9 }
 0x218   : > { %3865 = vmatprep.subr.bf16.mxu0 %v4106_v28  ;;  %v382_v15 = vld [vmem:[%s4950_s19 + $0x578] sm:$0xff] }
 0x219   : > { %3905 = vmatpush1.bf16.msra.mxu1 %v4377_v27  ;;  %v630_v17 = vld [vmem:[%s4950_s19 + $0xd38] sm:$0xff]  ;;  %v4250_v22 = vcombine.high %v374_v14, %v382_v15  ;;  %v4249_v28 = vcombine.low %v374_v14, %v382_v15 }
 0x21a   : > { %3906 = vmatprep.subr.bf16.mxu1 %v4362_v29  ;;  %v638_v18 = vld [vmem:[%s4950_s19 + $0xd78] sm:$0xff] }
 0x21b   : > { %3866 = vmatpush1.bf16.msra.mxu0 %v4105_v34  ;;  %v4506_v23 = vcombine.high %v630_v17, %v638_v18  ;;  %v358_v24 = vld [vmem:[%s4950_s19 + $0x4b8] sm:$0xff]  ;;  %v4505_v29 = vcombine.low %v630_v17, %v638_v18 }
 0x21c   : > { %3867 = vmatprep.subr.bf16.mxu0 %v4090_v36  ;;  %v366_v25 = vld [vmem:[%s4950_s19 + $0x4f8] sm:$0xff] }
 0x21d   : > { %3907 = vmatpush1.bf16.msra.mxu1 %v4361_v35  ;;  %v614_v26 = vld [vmem:[%s4950_s19 + $0xcb8] sm:$0xff]  ;;  %v4234_v30 = vcombine.high %v358_v24, %v366_v25  ;;  %v4233_v36 = vcombine.low %v358_v24, %v366_v25 }
 0x21e   : > { %3908 = vmatprep.subr.bf16.mxu1 %v4346_v37  ;;  %v622_v27 = vld [vmem:[%s4950_s19 + $0xcf8] sm:$0xff] }
 0x21f   : > { %3868 = vmatpush1.bf16.msra.mxu0 %v4089_v42  ;;  %v4490_v31 = vcombine.high %v614_v26, %v622_v27  ;;  %v342_v32 = vld [vmem:[%s4950_s19 + $0x438] sm:$0xff]  ;;  %v4489_v37 = vcombine.low %v614_v26, %v622_v27 }
 0x220   : > { %3869 = vmatprep.subr.bf16.mxu0 %v4330_v44  ;;  %v350_v33 = vld [vmem:[%s4950_s19 + $0x478] sm:$0xff] }
 0x221   : > { %3909 = vmatpush1.bf16.msra.mxu1 %v4345_v43  ;;  %v598_v34 = vld [vmem:[%s4950_s19 + $0xc38] sm:$0xff]  ;;  %v4218_v38 = vcombine.high %v342_v32, %v350_v33  ;;  %v4217_v40 = vcombine.low %v342_v32, %v350_v33 }
 0x222   : > { %3910 = vmatprep.subr.bf16.mxu1 %v4586_v45  ;;  %v606_v35 = vld [vmem:[%s4950_s19 + $0xc78] sm:$0xff] }
 0x223   : > { %3870 = vmatpush2.bf16.msra.mxu0 %v4329_v50  ;;  %v4474_v39 = vcombine.high %v598_v34, %v606_v35  ;;  %v4473_v41 = vcombine.low %v598_v34, %v606_v35 }
 0x224   : > { %3871 = vmatprep.subr.bf16.mxu0 %v4314_v52 }
 0x225   : > { %3911 = vmatpush2.bf16.msra.mxu1 %v4585_v51 }
 0x226   : > { %3912 = vmatprep.subr.bf16.mxu1 %v4570_v53 }
 0x227   : > { %3872 = vmatpush2.bf16.msra.mxu0 %v4313_v60 }
 0x228   : > { %3873 = vmatprep.subr.bf16.mxu0 %v4298_v62 }
 0x229   : > { %3913 = vmatpush2.bf16.msra.mxu1 %v4569_v61 }
 0x22a   : > { %3914 = vmatprep.subr.bf16.mxu1 %v4554_v63 }
 0x22b   : > { %3874 = vmatpush2.bf16.msra.mxu0 %v4297_v3 }
 0x22c   : > { %3875 = vmatprep.subr.bf16.mxu0 %v4282_v5 }
 0x22d   : > { %3915 = vmatpush2.bf16.msra.mxu1 %v4553_v4 }
 0x22e   : > { %3916 = vmatprep.subr.bf16.mxu1 %v4538_v6 }
 0x22f   : > { %3876 = vmatpush2.bf16.msra.mxu0 %v4281_v10 }
 0x230   : > { %3877 = vmatprep.subr.bf16.mxu0 %v4266_v12 }
 0x231   : > { %3917 = vmatpush2.bf16.msra.mxu1 %v4537_v11 }
 0x232   : > { %3918 = vmatprep.subr.bf16.mxu1 %v4522_v13 }
 0x233   : > { %3878 = vmatpush2.bf16.msra.mxu0 %v4265_v20 }
 0x234   : > { %3879 = vmatprep.subr.bf16.mxu0 %v4250_v22 }
 0x235   : > { %3919 = vmatpush2.bf16.msra.mxu1 %v4521_v21 }
 0x236   : > { %3920 = vmatprep.subr.bf16.mxu1 %v4506_v23 }
 0x237   : > { %3880 = vmatpush2.bf16.msra.mxu0 %v4249_v28 }
 0x238   : > { %3881 = vmatprep.subr.bf16.mxu0 %v4234_v30 }
 0x239   : > { %3921 = vmatpush2.bf16.msra.mxu1 %v4505_v29 }
 0x23a   : > { %3922 = vmatprep.subr.bf16.mxu1 %v4490_v31 }
 0x23b   : > { %3882 = vmatpush2.bf16.msra.mxu0 %v4233_v36 }
 0x23c   : > { %3883 = vmatprep.subr.bf16.mxu0 %v4218_v38 }
 0x23d   : > { %3923 = vmatpush2.bf16.msra.mxu1 %v4489_v37 }
 0x23e   : > { %3924 = vmatprep.subr.bf16.mxu1 %v4474_v39 }
 0x23f   : > { %3884 = vmatpush2.bf16.msra.mxu0 %v4217_v40 }
 0x241   : > { %3925 = vmatpush2.bf16.msra.mxu1 %v4473_v41 }
 0x242   : > { %v3641_v42 = vpop.f32.mrf.mxu0  ;;  %3886 = vmatmul.mubr.bf16.vlgmr.msra.gmra.mxu0 %v5032_v16 }
 0x244   : > { %v3682_v43 = vpop.f32.mrf.mxu1  ;;  %3927 = vmatmul.mubr.bf16.vlgmr.msra.gmra.mxu1 %v5036_v19  ;;  %v3643_v45 = vpop.f32.mrf.mxu0 }
 0x245   : > { %v3683_v44 = vadd.f32 %v3682_v43, %v3641_v42 }
 0x246   : > { %v3684_v46 = vpop.f32.mrf.mxu1  ;;  %v3645_v48 = vpop.f32.mrf.mxu0 }
 0x247   : > { %3943 = vst [vmem:[%s5252_s20 + $0x40] sm:$0xff] %v3683_v44  ;;  %v3685_v47 = vadd.f32 %v3684_v46, %v3643_v45 }
 0x248   : > { %v3686_v49 = vpop.f32.mrf.mxu1  ;;  %v3646_v50 = vpop.f32.mrf.mxu0 }
 0x249   : > { %3944 = vst [vmem:[%s5252_s20 + $0x48] sm:$0xff] %v3685_v47 }
 0x24a   : > { %v3687_v51 = vpop.f32.mrf.mxu1 }
 0x282   : > { %v3723_v52 = vpop.f32.mrf.mxu0 }
 0x284   : > { %v3764_v53 = vpop.f32.mrf.mxu1  ;;  %v3725_v16 = vpop.f32.mrf.mxu0 }
 0x285   : > { %v3765_v54 = vadd.f32 %v3764_v53, %v3723_v52 }
 0x286   : > { %v3766_v55 = vpop.f32.mrf.mxu1  ;;  %v3727_v56 = vpop.f32.mrf.mxu0 }
 0x287   : > { %3945 = vst [vmem:[%s5252_s20 + $0x50] sm:$0xff] %v3765_v54  ;;  %v3767_v19 = vadd.f32 %v3766_v55, %v3725_v16 }
 0x288   : > { %v3768_v57 = vpop.f32.mrf.mxu1  ;;  %v3728_v60 = vpop.f32.mrf.mxu0 }
 0x289   : > { %3946 = vst [vmem:[%s5252_s20 + $0x58] sm:$0xff] %v3767_v19 }
 0x28a   : > { %v3769_v61 = vpop.f32.mrf.mxu1 }
 0x2c2   : > { %v3805_v62 = vpop.f32.mrf.mxu0 }
 0x2c4   : > { %v3846_v63 = vpop.f32.mrf.mxu1  ;;  %v3807_v1 = vpop.f32.mrf.mxu0 }
 0x2c5   : > { %v3847_v0 = vadd.f32 %v3846_v63, %v3805_v62 }
 0x2c6   : > { %v3848_v2 = vpop.f32.mrf.mxu1  ;;  %v3809_v3 = vpop.f32.mrf.mxu0 }
 0x2c7   : > { %3947 = vst [vmem:[%s5252_s20 + $0x60] sm:$0xff] %v3847_v0  ;;  %v3849_v58 = vadd.f32 %v3848_v2, %v3807_v1 }
 0x2c8   : > { %v3850_v4 = vpop.f32.mrf.mxu1  ;;  %v3810_v5 = vpop.f32.mrf.mxu0 }
 0x2c9   : > { %3948 = vst [vmem:[%s5252_s20 + $0x68] sm:$0xff] %v3849_v58 }
 0x2ca   : > { %v3851_v6 = vpop.f32.mrf.mxu1 }
 0x302   : > { %v3887_v59 = vpop.f32.mrf.mxu0 }
 0x304   : > { %v3928_v7 = vpop.f32.mrf.mxu1  ;;  %v3889_v9 = vpop.f32.mrf.mxu0 }
 0x305   : > { %v3929_v8 = vadd.f32 %v3928_v7, %v3887_v59 }
 0x306   : > { %v3930_v10 = vpop.f32.mrf.mxu1  ;;  %v3891_v12 = vpop.f32.mrf.mxu0 }
 0x307   : > { %3949 = vst [vmem:[%s5252_s20 + $0x70] sm:$0xff] %v3929_v8  ;;  %v3931_v11 = vadd.f32 %v3930_v10, %v3889_v9 }
 0x308   : > { %v3932_v13 = vpop.f32.mrf.mxu1  ;;  %v3892_v14 = vpop.f32.mrf.mxu0 }
 0x309   : > { %3950 = vst [vmem:[%s5252_s20 + $0x78] sm:$0xff] %v3931_v11 }
 0x30a   : > { %v3933_v15 = vpop.f32.mrf.mxu1 }
 0x30b   : > { %4737 = shalt.err (!%p4734_p9)
}
 0x30c   : > { %s4738_s5 = scalar_lea.hbm %s5531_s30, 2048  ;;  %s4742_s29 = scalar_lea.hbm %s5582_s2, 4096 }
 0x30d   : > { %p4739_p0 = scmp.ne.s32.totalorder %s5531_s30, %s4738_s5  ;;  %p4743_p10 = scmp.lt.s32.totalorder %s5531_s30, %s5582_s2 }
 0x30e   : > { %p4744_p11 = scmp.lt.s32.totalorder %s4742_s29, %s4738_s5 }
 0x30f   : > { %p4740_p2 = pnand %p4739_p0, %p5594_p13 }
 0x310   : > { %p4745_p4 = por %p4744_p11, %p4743_p10 }
 0x311   : > { %p4741_p6 = pneg %p4740_p2 }
 0x313   : > { %p4746_p3 = pnand %p4745_p4, %p4741_p6 }
 0x315   : > { %4749 = shalt.err (!%p4746_p3)
}
 0x316   : > { %4600 = dma.vmem_to_hbm [thread:$0]  (%p5594_p13), %s5533_s26, 2048, %s5531_s30, %s3952_s12  }
 0x317 PF: > { %s3980_s19 = sand.u32 1, %s4788_s9   ;;  %p5595_p5 = scmp.ne.s32.totalorder %s5589_s22, 0 }
 0x318   : > { %p5596_p1 = scmp.ge.s32.totalorder %s4808_s14, 2  ;;  %s3981_s18 = scalar_lea.sflag [#allocation4], %s3980_s19 }
 0x31a   : > { %p4611_p12 = pnand %p5596_p1, %p5595_p5 }
 0x31c   : > { %p4612_p7 = pneg %p4611_p12 }
 0x31e   : > { %4783 = dma.done.wait (%p4612_p7), %s3981_s18, 2048  }
 0x31f   : > { %4785 = vsyncadd (%p4612_p7), %s3981_s18, 4294965248  ;;  %s19_s14 = sadd.s32 1, %s4808_s14   ;;  %s5597_s9 = smov %s4792_s10 }
 0x320   : > { %p16_p8 = scmp.ge.s32.totalorder %s19_s14, 4   ;;  %s5598_s10 = smov %s4796_s11 }
 0x321   : > { %s5599_s11 = smov %s4933_s27  ;;  %s5600_s12 = smov %s4804_s13 }
 0x322   : > { %s5601_s13 = smov %s5603_s28  ;;  %18 = sbr.rel (!%p16_p8) target bundleno = 7 (0x7), region = 79 }
 0x327   :  { %3986 = vsyncpa [#allocation3], 1 }
 0x328   :  { %3988 = vsyncpa [#allocation3 + $0x1], 1 }
 0x329   :  { %3989 = vsyncpa [#allocation6], 1 }
 0x32a   :  { %3991 = vsyncpa [#allocation6 + $0x1], 1 }
 0x32b   :  { %3992 = vsyncpa [#allocation4], 1 }
 0x32c   :  { %3994 = vsyncpa [#allocation4 + $0x1], 1 }

</bundles_post_ra>
